<compile_context>
chip_gen: v6e
topology: v6e:2x2x1
jax: 0.10.0
libtpu: 0.0.40
codegen_flags: <defaults>
</compile_context>

<pallas_src>
import functools
import math

import jax
import jax.numpy as jnp
from jax.experimental import pallas as pl
from jax.experimental.pallas import tpu as pltpu

CFG = dict(vocab=100, max_pos=32, type_vocab=2,
           hidden=32, n_layers=2, n_heads=2, intermediate=64)
LN_EPS = 1e-12


# --------------------------------------------------------------------------
# In-kernel helpers
# --------------------------------------------------------------------------
def _layernorm(h, g, b, eps=LN_EPS):
    mu = jnp.mean(h, axis=-1, keepdims=True)
    d = h - mu
    var = jnp.mean(d * d, axis=-1, keepdims=True)
    return d * jax.lax.rsqrt(var + eps) * g + b


def _mm(a, w):
    # bf16 MXU operands, f32 accumulation (review: v6e/v7x MXU rate, half DMA).
    return jnp.dot(a.astype(jnp.bfloat16), w.astype(jnp.bfloat16),
                   preferred_element_type=jnp.float32)


def _gelu(x):
    # TODO(synk): HF BERT default is erf-GELU; tanh approximation used here.
    c = math.sqrt(2.0 / math.pi)
    return 0.5 * x * (1.0 + jnp.tanh(c * (x + 0.044715 * x * x * x)))


# --------------------------------------------------------------------------
# Fused encoder kernel: grid = (num_layers,), activations resident in VMEM
# --------------------------------------------------------------------------
def _encoder_kernel(x0_ref, mask_ref, emb_g_ref, emb_b_ref,
                    wqkv_ref, bqkv_ref, wo_ref, bo_ref, ln1g_ref, ln1b_ref,
                    w1_ref, b1_ref, w2_ref, b2_ref, ln2g_ref, ln2b_ref,
                    out_ref, x_vmem, ctx_vmem,
                    *, num_seq, seq_len, n_heads, head_dim):
    layer = pl.program_id(0)
    hidden = n_heads * head_dim
    scale = 1.0 / math.sqrt(head_dim)

    # Embedding LayerNorm (LN-only path, no fake zero residual) on first step.
    @pl.when(layer == 0)
    def _():
        x_vmem[...] = _layernorm(x0_ref[...], emb_g_ref[...], emb_b_ref[...])

    x = x_vmem[...]                                            # (NS, H) f32

    # ---- fused QKV projection ----
    qkv = _mm(x, wqkv_ref[0]) + bqkv_ref[0]                    # (NS, 3H) f32
    q = qkv[:, 0:hidden]
    k = qkv[:, hidden:2 * hidden]
    v = qkv[:, 2 * hidden:3 * hidden]

    # ---- per (sequence, head) scaled-dot-product attention ----
    dn = (((1,), (1,)), ((), ()))      # contract last dims: Q @ K^T without .T
    for b in range(num_seq):
        r0 = b * seq_len
        mrow = mask_ref[b]                                     # (1, S) additive mask
        for h in range(n_heads):
            c0 = h * head_dim
            qh = q[r0:r0 + seq_len, c0:c0 + head_dim]
            kh = k[r0:r0 + seq_len, c0:c0 + head_dim]
            vh = v[r0:r0 + seq_len, c0:c0 + head_dim]
            s = jax.lax.dot_general(qh.astype(jnp.bfloat16),
                                    kh.astype(jnp.bfloat16),
                                    dn, preferred_element_type=jnp.float32)
            s = s * scale + mrow
            s = s - jnp.max(s, axis=-1, keepdims=True)
            p = jnp.exp(s)
            p = p * pl.reciprocal(jnp.sum(p, axis=-1, keepdims=True), approx=True)
            ctx_vmem[r0:r0 + seq_len, c0:c0 + head_dim] = jnp.dot(
                p.astype(jnp.bfloat16), vh.astype(jnp.bfloat16),
                preferred_element_type=jnp.float32)

    # ---- output projection + residual + LayerNorm (fused epilogue) ----
    attn = _mm(ctx_vmem[...], wo_ref[0]) + bo_ref[0]
    x = _layernorm(attn + x, ln1g_ref[0], ln1b_ref[0])

    # ---- fused FFN: w1 -> GELU -> w2 + residual + LayerNorm ----
    hmid = _gelu(_mm(x, w1_ref[0]) + b1_ref[0])
    ffn = _mm(hmid, w2_ref[0]) + b2_ref[0]
    x = _layernorm(ffn + x, ln2g_ref[0], ln2b_ref[0])

    x_vmem[...] = x
    out_ref[...] = x        # constant output block -> written back once at end


def bert_encoder(params, x0, ext_mask):
    NS, H = x0.shape
    N, _, S = ext_mask.shape
    L = CFG["n_layers"]
    I = CFG["intermediate"]
    n_heads = CFG["n_heads"]

    kern = functools.partial(_encoder_kernel, num_seq=N, seq_len=S,
                             n_heads=n_heads, head_dim=H // n_heads)

    const2 = lambda l: (0, 0)
    const3 = lambda l: (0, 0, 0)
    per_layer = lambda l: (l, 0, 0)

    # NOTE: at real BERT sizes the per-layer weight blocks would need K-axis
    # tiling / a larger vmem_limit on v7x (64 MiB VMEM); trivial at this size.
    return pl.pallas_call(
        kern,
        out_shape=jax.ShapeDtypeStruct((NS, H), jnp.float32),
        grid_spec=pltpu.PrefetchScalarGridSpec(
            num_scalar_prefetch=0,
            grid=(L,),
            in_specs=[
                pl.BlockSpec((NS, H), const2),           # x0 (embedding sum, pre-LN)
                pl.BlockSpec((N, 1, S), const3),         # additive attention mask
                pl.BlockSpec((1, H), const2),            # emb LN gamma
                pl.BlockSpec((1, H), const2),            # emb LN beta
                pl.BlockSpec((1, H, 3 * H), per_layer),  # wqkv (fused)
                pl.BlockSpec((1, 1, 3 * H), per_layer),  # bqkv
                pl.BlockSpec((1, H, H), per_layer),      # wo
                pl.BlockSpec((1, 1, H), per_layer),      # bo
                pl.BlockSpec((1, 1, H), per_layer),      # ln1 gamma
                pl.BlockSpec((1, 1, H), per_layer),      # ln1 beta
                pl.BlockSpec((1, H, I), per_layer),      # w1
                pl.BlockSpec((1, 1, I), per_layer),      # b1
                pl.BlockSpec((1, I, H), per_layer),      # w2
                pl.BlockSpec((1, 1, H), per_layer),      # b2
                pl.BlockSpec((1, 1, H), per_layer),      # ln2 gamma
                pl.BlockSpec((1, 1, H), per_layer),      # ln2 beta
            ],
            out_specs=pl.BlockSpec((NS, H), const2),
            scratch_shapes=[pltpu.VMEM((NS, H), jnp.float32),   # resident x
                            pltpu.VMEM((NS, H), jnp.float32)],  # attention context
        ),
        compiler_params=pltpu.CompilerParams(
            dimension_semantics=("arbitrary",)),   # do NOT split tiny grid across TCs
    )(x0, ext_mask,
      params["emb_ln_g"], params["emb_ln_b"],
      params["wqkv"], params["bqkv"], params["wo"], params["bo"],
      params["ln1_g"], params["ln1_b"], params["w1"], params["b1"],
      params["w2"], params["b2"], params["ln2_g"], params["ln2_b"])


# --------------------------------------------------------------------------
# Fused pooler + classifier + cross-entropy kernel
# --------------------------------------------------------------------------
def _head_kernel(first_ref, pw_ref, pb_ref, cw_ref, cb_ref, lab_ref,
                 logits_ref, loss_ref, *, batch, n_choices):
    pw = pw_ref[...]
    pb = pb_ref[...]
    cw = cw_ref[...]          # (1, H) classifier weight row
    cb = cb_ref[...]          # (1, 1)
    idx = jax.lax.broadcasted_iota(jnp.int32, (n_choices, 1), 0)
    total = jnp.zeros((1, 1), jnp.float32)
    for b in range(batch):
        xb = first_ref[b]                                  # (C, H) first tokens
        pooled = jnp.tanh(_mm(xb, pw) + pb)                # BERT pooler
        # TODO(synk): classifier dropout is identity at inference; omitted.
        zb = jnp.sum(pooled * cw, axis=-1, keepdims=True) + cb   # (C, 1) logits
        logits_ref[b] = zb
        m = jnp.max(zb, axis=0, keepdims=True)
        lse = m + jnp.log(jnp.sum(jnp.exp(zb - m), axis=0, keepdims=True))
        chosen = jnp.sum(jnp.where(idx == lab_ref[b], zb, 0.0),
                         axis=0, keepdims=True)
        total = total + (lse - chosen)
    loss_ref[...] = total * (1.0 / batch)


def pooler_classifier_loss(params, first_tok, labels):
    B, C, H = first_tok.shape
    kern = functools.partial(_head_kernel, batch=B, n_choices=C)
    logits3, loss = pl.pallas_call(
        kern,
        out_shape=(jax.ShapeDtypeStruct((B, C, 1), jnp.float32),
                   jax.ShapeDtypeStruct((1, 1), jnp.float32)),
        in_specs=[pl.BlockSpec(memory_space=pltpu.MemorySpace.VMEM)] * 5
                 + [pl.BlockSpec(memory_space=pltpu.MemorySpace.SMEM)],
        out_specs=(pl.BlockSpec(memory_space=pltpu.MemorySpace.VMEM),
                   pl.BlockSpec(memory_space=pltpu.MemorySpace.VMEM)),
    )(first_tok, params["pool_w"], params["pool_b"],
      params["cls_w"], params["cls_b"], labels)
    return logits3.reshape(B, C), loss[0, 0]


# --------------------------------------------------------------------------
# Parameters and forward
# --------------------------------------------------------------------------
def init_params(key):
    H, I, L = CFG["hidden"], CFG["intermediate"], CFG["n_layers"]
    ks = iter(jax.random.split(key, 16))

    def nrm(shape, dtype=jnp.float32):
        return (jax.random.normal(next(ks), shape, jnp.float32) * 0.02).astype(dtype)

    return dict(
        word_emb=nrm((CFG["vocab"], H)),
        pos_emb=nrm((CFG["max_pos"], H)),
        type_emb=nrm((CFG["type_vocab"], H)),
        emb_ln_g=jnp.ones((1, H), jnp.float32),
        emb_ln_b=jnp.zeros((1, H), jnp.float32),
        # per-layer weights stacked along a leading [L] axis; MXU operands in bf16
        wqkv=nrm((L, H, 3 * H), jnp.bfloat16),
        bqkv=jnp.zeros((L, 1, 3 * H), jnp.float32),
        wo=nrm((L, H, H), jnp.bfloat16),
        bo=jnp.zeros((L, 1, H), jnp.float32),
        ln1_g=jnp.ones((L, 1, H), jnp.float32),
        ln1_b=jnp.zeros((L, 1, H), jnp.float32),
        w1=nrm((L, H, I), jnp.bfloat16),
        b1=jnp.zeros((L, 1, I), jnp.float32),
        w2=nrm((L, I, H), jnp.bfloat16),
        b2=jnp.zeros((L, 1, H), jnp.float32),
        ln2_g=jnp.ones((L, 1, H), jnp.float32),
        ln2_b=jnp.zeros((L, 1, H), jnp.float32),
        pool_w=nrm((H, H), jnp.bfloat16),
        pool_b=jnp.zeros((1, H), jnp.float32),
        cls_w=nrm((1, H)),                   # Linear(H, 1) as a row (VPU dot)
        cls_b=jnp.zeros((1, 1), jnp.float32),
    )


def multiple_choice_forward(params, input_ids, attention_mask, token_type_ids,
                            labels=None):
    B, C, S = input_ids.shape            # C = num_choices
    H = CFG["hidden"]
    ids = input_ids.reshape(B * C, S)
    am = attention_mask.reshape(B * C, S)
    tt = token_type_ids.reshape(B * C, S)

    # Embedding gathers are glue; the embedding LayerNorm runs in the kernel.
    emb = (jnp.take(params["word_emb"], ids, axis=0)
           + params["pos_emb"][None, :S, :]
           + jnp.take(params["type_emb"], tt, axis=0))
    x0 = emb.reshape(B * C * S, H)
    ext_mask = ((1.0 - am.astype(jnp.float32)) * -1e9).reshape(B * C, 1, S)

    hidden = bert_encoder(params, x0, ext_mask)                 # (B*C*S, H)
    first_tok = hidden.reshape(B * C, S, H)[:, 0, :].reshape(B, C, H)

    lbl = labels if labels is not None else jnp.zeros((B,), jnp.int32)
    logits, loss = pooler_classifier_loss(params, first_tok, lbl)
    if labels is None:
        loss = None
    # TODO(synk): hidden_states / attentions outputs are not materialized
    # (reference default config returns None for both).
    return loss, logits


# --------------------------------------------------------------------------
if __name__ == "__main__":
    key = jax.random.PRNGKey(0)
    kp, ki, kl = jax.random.split(key, 3)

    B, C, S = 2, 2, 8          # batch, num_choices, seq_len
    params = init_params(kp)

    input_ids = jax.random.randint(ki, (B, C, S), 0, CFG["vocab"], dtype=jnp.int32)
    attention_mask = jnp.ones((B, C, S), dtype=jnp.int32).at[1, :, 6:].set(0)
    token_type_ids = jnp.concatenate(
        [jnp.zeros((B, C, S // 2), jnp.int32), jnp.ones((B, C, S // 2), jnp.int32)],
        axis=-1)
    labels = jax.random.randint(kl, (B,), 0, C, dtype=jnp.int32)

    fwd = jax.jit(multiple_choice_forward)
    loss, logits = fwd(params, input_ids, attention_mask, token_type_ids, labels)
    jax.block_until_ready((loss, logits))

    assert logits.shape == (B, C)
    assert bool(jnp.isfinite(loss)) and bool(jnp.all(jnp.isfinite(logits)))
    print("KERNEL_OK")
</pallas_src>

<mosaic_0001>
module attributes {stable_mosaic.version = 11 : i64} {
  func.func @_head_kernel(%arg0: memref<2x2x32xf32, #tpu.memory_space<vmem>>, %arg1: memref<32x32xbf16, #tpu.memory_space<vmem>>, %arg2: memref<1x32xf32, #tpu.memory_space<vmem>>, %arg3: memref<1x32xf32, #tpu.memory_space<vmem>>, %arg4: memref<1x1xf32, #tpu.memory_space<vmem>>, %arg5: memref<2xi32, #tpu.memory_space<smem>>, %arg6: memref<2x2x1xf32, #tpu.memory_space<vmem>>, %arg7: memref<1x1xf32, #tpu.memory_space<vmem>>) attributes {dimension_semantics = [], scalar_prefetch = 0 : i64, scratch_operands = 0 : i64, tpu.core_type = #tpu.core_type<tc>} {
    %c0 = arith.constant 0 : index
    %c0_0 = arith.constant 0 : index
    %0 = vector.load %arg1[%c0, %c0_0] : memref<32x32xbf16, #tpu.memory_space<vmem>>, vector<32x32xbf16>
    %c0_1 = arith.constant 0 : index
    %c0_2 = arith.constant 0 : index
    %1 = vector.load %arg2[%c0_1, %c0_2] : memref<1x32xf32, #tpu.memory_space<vmem>>, vector<1x32xf32>
    %c0_3 = arith.constant 0 : index
    %c0_4 = arith.constant 0 : index
    %2 = vector.load %arg3[%c0_3, %c0_4] : memref<1x32xf32, #tpu.memory_space<vmem>>, vector<1x32xf32>
    %c0_5 = arith.constant 0 : index
    %c0_6 = arith.constant 0 : index
    %3 = vector.load %arg4[%c0_5, %c0_6] : memref<1x1xf32, #tpu.memory_space<vmem>>, vector<1x1xf32>
    %4 = tpu.iota {dimensions = array<i32: 0>} : vector<2x1xi32>
    %cst = arith.constant 0.000000e+00 : f32
    %5 = vector.broadcast %cst : f32 to vector<1x1xf32>
    %c0_7 = arith.constant 0 : index
    %c0_8 = arith.constant 0 : index
    %c0_9 = arith.constant 0 : index
    %6 = vector.load %arg0[%c0_7, %c0_8, %c0_9] : memref<2x2x32xf32, #tpu.memory_space<vmem>>, vector<1x2x32xf32>
    %7 = vector.shape_cast %6 : vector<1x2x32xf32> to vector<2x32xf32>
    %8 = arith.truncf %7 : vector<2x32xf32> to vector<2x32xbf16>
    %cst_10 = arith.constant dense<0.000000e+00> : vector<2x32xf32>
    %9 = tpu.matmul %8, %0, %cst_10 {dimension_numbers = #tpu.dot_dimension_numbers<[1], [0], [0], [1], [0, 0, 1, 1], [], []>} : vector<2x32xbf16>, vector<32x32xbf16>, vector<2x32xf32> -> vector<2x32xf32>
    %10 = vector.broadcast %1 : vector<1x32xf32> to vector<2x32xf32>
    %11 = arith.addf %9, %10 : vector<2x32xf32>
    %12 = math.tanh %11 : vector<2x32xf32>
    %13 = vector.broadcast %2 : vector<1x32xf32> to vector<2x32xf32>
    %14 = arith.mulf %12, %13 : vector<2x32xf32>
    %cst_11 = arith.constant dense<0.000000e+00> : vector<2xf32>
    %15 = vector.multi_reduction <add>, %14, %cst_11 [1] : vector<2x32xf32> to vector<2xf32>
    %16 = vector.shape_cast %15 : vector<2xf32> to vector<2x1xf32>
    %17 = vector.broadcast %3 : vector<1x1xf32> to vector<2x1xf32>
    %18 = arith.addf %16, %17 : vector<2x1xf32>
    %c0_12 = arith.constant 0 : index
    %c0_13 = arith.constant 0 : index
    %c0_14 = arith.constant 0 : index
    %19 = vector.load %arg6[%c0_12, %c0_13, %c0_14] : memref<2x2x1xf32, #tpu.memory_space<vmem>>, vector<1x2x1xf32>
    %20 = vector.shape_cast %19 : vector<1x2x1xf32> to vector<2x1xf32>
    %21 = vector.shape_cast %18 : vector<2x1xf32> to vector<1x2x1xf32>
    tpu.vector_store %arg6[%c0_12, %c0_13, %c0_14], %21 {strides = array<i32>} : memref<2x2x1xf32, #tpu.memory_space<vmem>>, vector<1x2x1xf32>,
    %cst_15 = arith.constant dense<0xFF800000> : vector<1xf32>
    %22 = vector.multi_reduction <maximumf>, %18, %cst_15 [0] : vector<2x1xf32> to vector<1xf32>
    %23 = vector.shape_cast %22 : vector<1xf32> to vector<1x1xf32>
    %24 = vector.broadcast %23 : vector<1x1xf32> to vector<2x1xf32>
    %25 = arith.subf %18, %24 : vector<2x1xf32>
    %26 = math.exp %25 : vector<2x1xf32>
    %cst_16 = arith.constant dense<0.000000e+00> : vector<1xf32>
    %27 = vector.multi_reduction <add>, %26, %cst_16 [0] : vector<2x1xf32> to vector<1xf32>
    %28 = vector.shape_cast %27 : vector<1xf32> to vector<1x1xf32>
    %29 = math.log %28 : vector<1x1xf32>
    %30 = arith.addf %23, %29 : vector<1x1xf32>
    %c0_17 = arith.constant 0 : index
    %31 = memref.load %arg5[%c0_17] : memref<2xi32, #tpu.memory_space<smem>>
    %32 = vector.broadcast %31 : i32 to vector<2x1xi32>
    %33 = arith.cmpi eq, %4, %32 : vector<2x1xi32>
    %cst_18 = arith.constant 0.000000e+00 : f32
    %34 = vector.broadcast %cst_18 : f32 to vector<2x1xf32>
    %35 = arith.select %33, %18, %34 : vector<2x1xi1>, vector<2x1xf32>
    %cst_19 = arith.constant dense<0.000000e+00> : vector<1xf32>
    %36 = vector.multi_reduction <add>, %35, %cst_19 [0] : vector<2x1xf32> to vector<1xf32>
    %37 = vector.shape_cast %36 : vector<1xf32> to vector<1x1xf32>
    %38 = arith.subf %30, %37 : vector<1x1xf32>
    %39 = arith.addf %5, %38 : vector<1x1xf32>
    %c1 = arith.constant 1 : index
    %c0_20 = arith.constant 0 : index
    %c0_21 = arith.constant 0 : index
    %40 = vector.load %arg0[%c1, %c0_20, %c0_21] : memref<2x2x32xf32, #tpu.memory_space<vmem>>, vector<1x2x32xf32>
    %41 = vector.shape_cast %40 : vector<1x2x32xf32> to vector<2x32xf32>
    %42 = arith.truncf %41 : vector<2x32xf32> to vector<2x32xbf16>
    %cst_22 = arith.constant dense<0.000000e+00> : vector<2x32xf32>
    %43 = tpu.matmul %42, %0, %cst_22 {dimension_numbers = #tpu.dot_dimension_numbers<[1], [0], [0], [1], [0, 0, 1, 1], [], []>} : vector<2x32xbf16>, vector<32x32xbf16>, vector<2x32xf32> -> vector<2x32xf32>
    %44 = vector.broadcast %1 : vector<1x32xf32> to vector<2x32xf32>
    %45 = arith.addf %43, %44 : vector<2x32xf32>
    %46 = math.tanh %45 : vector<2x32xf32>
    %47 = vector.broadcast %2 : vector<1x32xf32> to vector<2x32xf32>
    %48 = arith.mulf %46, %47 : vector<2x32xf32>
    %cst_23 = arith.constant dense<0.000000e+00> : vector<2xf32>
    %49 = vector.multi_reduction <add>, %48, %cst_23 [1] : vector<2x32xf32> to vector<2xf32>
    %50 = vector.shape_cast %49 : vector<2xf32> to vector<2x1xf32>
    %51 = vector.broadcast %3 : vector<1x1xf32> to vector<2x1xf32>
    %52 = arith.addf %50, %51 : vector<2x1xf32>
    %c1_24 = arith.constant 1 : index
    %c0_25 = arith.constant 0 : index
    %c0_26 = arith.constant 0 : index
    %53 = vector.load %arg6[%c1_24, %c0_25, %c0_26] : memref<2x2x1xf32, #tpu.memory_space<vmem>>, vector<1x2x1xf32>
    %54 = vector.shape_cast %53 : vector<1x2x1xf32> to vector<2x1xf32>
    %55 = vector.shape_cast %52 : vector<2x1xf32> to vector<1x2x1xf32>
    tpu.vector_store %arg6[%c1_24, %c0_25, %c0_26], %55 {strides = array<i32>} : memref<2x2x1xf32, #tpu.memory_space<vmem>>, vector<1x2x1xf32>,
    %cst_27 = arith.constant dense<0xFF800000> : vector<1xf32>
    %56 = vector.multi_reduction <maximumf>, %52, %cst_27 [0] : vector<2x1xf32> to vector<1xf32>
    %57 = vector.shape_cast %56 : vector<1xf32> to vector<1x1xf32>
    %58 = vector.broadcast %57 : vector<1x1xf32> to vector<2x1xf32>
    %59 = arith.subf %52, %58 : vector<2x1xf32>
    %60 = math.exp %59 : vector<2x1xf32>
    %cst_28 = arith.constant dense<0.000000e+00> : vector<1xf32>
    %61 = vector.multi_reduction <add>, %60, %cst_28 [0] : vector<2x1xf32> to vector<1xf32>
    %62 = vector.shape_cast %61 : vector<1xf32> to vector<1x1xf32>
    %63 = math.log %62 : vector<1x1xf32>
    %64 = arith.addf %57, %63 : vector<1x1xf32>
    %c1_29 = arith.constant 1 : index
    %65 = memref.load %arg5[%c1_29] : memref<2xi32, #tpu.memory_space<smem>>
    %66 = vector.broadcast %65 : i32 to vector<2x1xi32>
    %67 = arith.cmpi eq, %4, %66 : vector<2x1xi32>
    %cst_30 = arith.constant 0.000000e+00 : f32
    %68 = vector.broadcast %cst_30 : f32 to vector<2x1xf32>
    %69 = arith.select %67, %52, %68 : vector<2x1xi1>, vector<2x1xf32>
    %cst_31 = arith.constant dense<0.000000e+00> : vector<1xf32>
    %70 = vector.multi_reduction <add>, %69, %cst_31 [0] : vector<2x1xf32> to vector<1xf32>
    %71 = vector.shape_cast %70 : vector<1xf32> to vector<1x1xf32>
    %72 = arith.subf %64, %71 : vector<1x1xf32>
    %73 = arith.addf %39, %72 : vector<1x1xf32>
    %cst_32 = arith.constant 5.000000e-01 : f32
    %74 = vector.broadcast %cst_32 : f32 to vector<1x1xf32>
    %75 = arith.mulf %73, %74 : vector<1x1xf32>
    %c0_33 = arith.constant 0 : index
    %c0_34 = arith.constant 0 : index
    %76 = vector.load %arg7[%c0_33, %c0_34] : memref<1x1xf32, #tpu.memory_space<vmem>>, vector<1x1xf32>
    tpu.vector_store %arg7[%c0_33, %c0_34], %75 {strides = array<i32>} : memref<1x1xf32, #tpu.memory_space<vmem>>, vector<1x1xf32>,
    return
  }
}

module attributes {stable_mosaic.version = 11 : i64} {
  func.func @_encoder_kernel(%arg0: i32, %arg1: memref<32x32xf32, #tpu.memory_space<vmem>>, %arg2: memref<4x1x8xf32, #tpu.memory_space<vmem>>, %arg3: memref<1x32xf32, #tpu.memory_space<vmem>>, %arg4: memref<1x32xf32, #tpu.memory_space<vmem>>, %arg5: memref<1x32x96xbf16, #tpu.memory_space<vmem>>, %arg6: memref<1x1x96xf32, #tpu.memory_space<vmem>>, %arg7: memref<1x32x32xbf16, #tpu.memory_space<vmem>>, %arg8: memref<1x1x32xf32, #tpu.memory_space<vmem>>, %arg9: memref<1x1x32xf32, #tpu.memory_space<vmem>>, %arg10: memref<1x1x32xf32, #tpu.memory_space<vmem>>, %arg11: memref<1x32x64xbf16, #tpu.memory_space<vmem>>, %arg12: memref<1x1x64xf32, #tpu.memory_space<vmem>>, %arg13: memref<1x64x32xbf16, #tpu.memory_space<vmem>>, %arg14: memref<1x1x32xf32, #tpu.memory_space<vmem>>, %arg15: memref<1x1x32xf32, #tpu.memory_space<vmem>>, %arg16: memref<1x1x32xf32, #tpu.memory_space<vmem>>, %arg17: memref<32x32xf32, #tpu.memory_space<vmem>>, %arg18: memref<32x32xf32, #tpu.memory_space<vmem>>, %arg19: memref<32x32xf32, #tpu.memory_space<vmem>>) attributes {dimension_semantics = [#tpu.dimension_semantics<arbitrary>], iteration_bounds = array<i64: 2>, scalar_prefetch = 0 : i64, scratch_operands = 2 : i64, tpu.core_type = #tpu.core_type<tc>, window_params = [{pipeline_mode = #tpu.pipeline_mode<synchronous>, transform_indices = @transform_0, window_bounds = array<i64: 32, 32>}, {pipeline_mode = #tpu.pipeline_mode<synchronous>, transform_indices = @transform_1, window_bounds = array<i64: 4, 1, 8>}, {pipeline_mode = #tpu.pipeline_mode<synchronous>, transform_indices = @transform_2, window_bounds = array<i64: 1, 32>}, {pipeline_mode = #tpu.pipeline_mode<synchronous>, transform_indices = @transform_3, window_bounds = array<i64: 1, 32>}, {transform_indices = @transform_4, window_bounds = array<i64: 1, 32, 96>}, {transform_indices = @transform_5, window_bounds = array<i64: 1, 1, 96>}, {transform_indices = @transform_6, window_bounds = array<i64: 1, 32, 32>}, {transform_indices = @transform_7, window_bounds = array<i64: 1, 1, 32>}, {transform_indices = @transform_8, window_bounds = array<i64: 1, 1, 32>}, {transform_indices = @transform_9, window_bounds = array<i64: 1, 1, 32>}, {transform_indices = @transform_10, window_bounds = array<i64: 1, 32, 64>}, {transform_indices = @transform_11, window_bounds = array<i64: 1, 1, 64>}, {transform_indices = @transform_12, window_bounds = array<i64: 1, 64, 32>}, {transform_indices = @transform_13, window_bounds = array<i64: 1, 1, 32>}, {transform_indices = @transform_14, window_bounds = array<i64: 1, 1, 32>}, {transform_indices = @transform_15, window_bounds = array<i64: 1, 1, 32>}, {pipeline_mode = #tpu.pipeline_mode<synchronous>, transform_indices = @transform_16, window_bounds = array<i64: 32, 32>}]} {
    %c0_i32 = arith.constant 0 : i32
    %0 = arith.cmpi eq, %arg0, %c0_i32 : i32
    %1 = arith.extui %0 : i1 to i32
    %c0_i32_0 = arith.constant 0 : i32
    %2 = arith.cmpi ne, %1, %c0_i32_0 : i32
    scf.if %2 {
      %c0_123 = arith.constant 0 : index
      %c0_124 = arith.constant 0 : index
      %305 = vector.load %arg1[%c0_123, %c0_124] : memref<32x32xf32, #tpu.memory_space<vmem>>, vector<32x32xf32>
      %c0_125 = arith.constant 0 : index
      %c0_126 = arith.constant 0 : index
      %306 = vector.load %arg3[%c0_125, %c0_126] : memref<1x32xf32, #tpu.memory_space<vmem>>, vector<1x32xf32>
      %c0_127 = arith.constant 0 : index
      %c0_128 = arith.constant 0 : index
      %307 = vector.load %arg4[%c0_127, %c0_128] : memref<1x32xf32, #tpu.memory_space<vmem>>, vector<1x32xf32>
      %cst_129 = arith.constant dense<0.000000e+00> : vector<32xf32>
      %308 = vector.multi_reduction <add>, %305, %cst_129 [1] : vector<32x32xf32> to vector<32xf32>
      %309 = vector.shape_cast %308 : vector<32xf32> to vector<32x1xf32>
      %cst_130 = arith.constant 3.200000e+01 : f32
      %310 = vector.broadcast %cst_130 : f32 to vector<32x1xf32>
      %311 = arith.divf %309, %310 : vector<32x1xf32>
      %312 = vector.broadcast %311 : vector<32x1xf32> to vector<32x32xf32>
      %313 = arith.subf %305, %312 : vector<32x32xf32>
      %314 = arith.mulf %313, %313 : vector<32x32xf32>
      %cst_131 = arith.constant dense<0.000000e+00> : vector<32xf32>
      %315 = vector.multi_reduction <add>, %314, %cst_131 [1] : vector<32x32xf32> to vector<32xf32>
      %316 = vector.shape_cast %315 : vector<32xf32> to vector<32x1xf32>
      %cst_132 = arith.constant 3.200000e+01 : f32
      %317 = vector.broadcast %cst_132 : f32 to vector<32x1xf32>
      %318 = arith.divf %316, %317 : vector<32x1xf32>
      %cst_133 = arith.constant 9.99999996E-13 : f32
      %319 = vector.broadcast %cst_133 : f32 to vector<32x1xf32>
      %320 = arith.addf %318, %319 : vector<32x1xf32>
      %321 = math.rsqrt %320 : vector<32x1xf32>
      %322 = vector.broadcast %321 : vector<32x1xf32> to vector<32x32xf32>
      %323 = arith.mulf %313, %322 : vector<32x32xf32>
      %324 = vector.broadcast %306 : vector<1x32xf32> to vector<32x32xf32>
      %325 = arith.mulf %323, %324 : vector<32x32xf32>
      %326 = vector.broadcast %307 : vector<1x32xf32> to vector<32x32xf32>
      %327 = arith.addf %325, %326 : vector<32x32xf32>
      %c0_134 = arith.constant 0 : index
      %c0_135 = arith.constant 0 : index
      %328 = vector.load %arg18[%c0_134, %c0_135] : memref<32x32xf32, #tpu.memory_space<vmem>>, vector<32x32xf32>
      tpu.vector_store %arg18[%c0_134, %c0_135], %327 {strides = array<i32>} : memref<32x32xf32, #tpu.memory_space<vmem>>, vector<32x32xf32>,
    } else {
    }
    %c0 = arith.constant 0 : index
    %c0_1 = arith.constant 0 : index
    %3 = vector.load %arg18[%c0, %c0_1] : memref<32x32xf32, #tpu.memory_space<vmem>>, vector<32x32xf32>
    %c0_2 = arith.constant 0 : index
    %c0_3 = arith.constant 0 : index
    %c0_4 = arith.constant 0 : index
    %4 = vector.load %arg5[%c0_2, %c0_3, %c0_4] : memref<1x32x96xbf16, #tpu.memory_space<vmem>>, vector<1x32x96xbf16>
    %5 = vector.shape_cast %4 : vector<1x32x96xbf16> to vector<32x96xbf16>
    %6 = arith.truncf %3 : vector<32x32xf32> to vector<32x32xbf16>
    %cst = arith.constant dense<0.000000e+00> : vector<32x96xf32>
    %7 = tpu.matmul %6, %5, %cst {dimension_numbers = #tpu.dot_dimension_numbers<[1], [0], [0], [1], [0, 0, 1, 1], [], []>} : vector<32x32xbf16>, vector<32x96xbf16>, vector<32x96xf32> -> vector<32x96xf32>
    %c0_5 = arith.constant 0 : index
    %c0_6 = arith.constant 0 : index
    %c0_7 = arith.constant 0 : index
    %8 = vector.load %arg6[%c0_5, %c0_6, %c0_7] : memref<1x1x96xf32, #tpu.memory_space<vmem>>, vector<1x1x96xf32>
    %9 = vector.shape_cast %8 : vector<1x1x96xf32> to vector<1x96xf32>
    %10 = vector.broadcast %9 : vector<1x96xf32> to vector<32x96xf32>
    %11 = arith.addf %7, %10 : vector<32x96xf32>
    %12 = vector.extract_strided_slice %11 {offsets = [0, 0], sizes = [32, 32], strides = [1, 1]} : vector<32x96xf32> to vector<32x32xf32>
    %13 = vector.extract_strided_slice %11 {offsets = [0, 32], sizes = [32, 32], strides = [1, 1]} : vector<32x96xf32> to vector<32x32xf32>
    %14 = vector.extract_strided_slice %11 {offsets = [0, 64], sizes = [32, 32], strides = [1, 1]} : vector<32x96xf32> to vector<32x32xf32>
    %c0_8 = arith.constant 0 : index
    %c0_9 = arith.constant 0 : index
    %c0_10 = arith.constant 0 : index
    %15 = vector.load %arg2[%c0_8, %c0_9, %c0_10] : memref<4x1x8xf32, #tpu.memory_space<vmem>>, vector<1x1x8xf32>
    %16 = vector.shape_cast %15 : vector<1x1x8xf32> to vector<1x8xf32>
    %17 = vector.extract_strided_slice %12 {offsets = [0, 0], sizes = [8, 16], strides = [1, 1]} : vector<32x32xf32> to vector<8x16xf32>
    %18 = vector.extract_strided_slice %13 {offsets = [0, 0], sizes = [8, 16], strides = [1, 1]} : vector<32x32xf32> to vector<8x16xf32>
    %19 = vector.extract_strided_slice %14 {offsets = [0, 0], sizes = [8, 16], strides = [1, 1]} : vector<32x32xf32> to vector<8x16xf32>
    %20 = arith.truncf %17 : vector<8x16xf32> to vector<8x16xbf16>
    %21 = arith.truncf %18 : vector<8x16xf32> to vector<8x16xbf16>
    %cst_11 = arith.constant dense<0.000000e+00> : vector<8x8xf32>
    %22 = tpu.matmul %20, %21, %cst_11 {dimension_numbers = #tpu.dot_dimension_numbers<[1], [1], [0], [0], [0, 0, 1, 0], [], []>} : vector<8x16xbf16>, vector<8x16xbf16>, vector<8x8xf32> -> vector<8x8xf32>
    %cst_12 = arith.constant 2.500000e-01 : f32
    %23 = vector.broadcast %cst_12 : f32 to vector<8x8xf32>
    %24 = arith.mulf %22, %23 : vector<8x8xf32>
    %25 = vector.broadcast %16 : vector<1x8xf32> to vector<8x8xf32>
    %26 = arith.addf %24, %25 : vector<8x8xf32>
    %cst_13 = arith.constant dense<0xFF800000> : vector<8xf32>
    %27 = vector.multi_reduction <maximumf>, %26, %cst_13 [1] : vector<8x8xf32> to vector<8xf32>
    %28 = vector.shape_cast %27 : vector<8xf32> to vector<8x1xf32>
    %29 = vector.broadcast %28 : vector<8x1xf32> to vector<8x8xf32>
    %30 = arith.subf %26, %29 : vector<8x8xf32>
    %31 = math.exp %30 : vector<8x8xf32>
    %cst_14 = arith.constant dense<0.000000e+00> : vector<8xf32>
    %32 = vector.multi_reduction <add>, %31, %cst_14 [1] : vector<8x8xf32> to vector<8xf32>
    %33 = vector.shape_cast %32 : vector<8xf32> to vector<8x1xf32>
    %34 = tpu.reciprocal %33 {approx = true} : vector<8x1xf32> -> vector<8x1xf32>
    %35 = vector.broadcast %34 : vector<8x1xf32> to vector<8x8xf32>
    %36 = arith.mulf %31, %35 : vector<8x8xf32>
    %37 = arith.truncf %36 : vector<8x8xf32> to vector<8x8xbf16>
    %38 = arith.truncf %19 : vector<8x16xf32> to vector<8x16xbf16>
    %cst_15 = arith.constant dense<0.000000e+00> : vector<8x16xf32>
    %39 = tpu.matmul %37, %38, %cst_15 {dimension_numbers = #tpu.dot_dimension_numbers<[1], [0], [0], [1], [0, 0, 1, 1], [], []>} : vector<8x8xbf16>, vector<8x16xbf16>, vector<8x16xf32> -> vector<8x16xf32>
    %c0_16 = arith.constant 0 : index
    %c0_17 = arith.constant 0 : index
    %40 = vector.load %arg19[%c0_16, %c0_17] : memref<32x32xf32, #tpu.memory_space<vmem>>, vector<8x16xf32>
    tpu.vector_store %arg19[%c0_16, %c0_17], %39 {strides = array<i32>} : memref<32x32xf32, #tpu.memory_space<vmem>>, vector<8x16xf32>,
    %41 = vector.extract_strided_slice %12 {offsets = [0, 16], sizes = [8, 16], strides = [1, 1]} : vector<32x32xf32> to vector<8x16xf32>
    %42 = vector.extract_strided_slice %13 {offsets = [0, 16], sizes = [8, 16], strides = [1, 1]} : vector<32x32xf32> to vector<8x16xf32>
    %43 = vector.extract_strided_slice %14 {offsets = [0, 16], sizes = [8, 16], strides = [1, 1]} : vector<32x32xf32> to vector<8x16xf32>
    %44 = arith.truncf %41 : vector<8x16xf32> to vector<8x16xbf16>
    %45 = arith.truncf %42 : vector<8x16xf32> to vector<8x16xbf16>
    %cst_18 = arith.constant dense<0.000000e+00> : vector<8x8xf32>
    %46 = tpu.matmul %44, %45, %cst_18 {dimension_numbers = #tpu.dot_dimension_numbers<[1], [1], [0], [0], [0, 0, 1, 0], [], []>} : vector<8x16xbf16>, vector<8x16xbf16>, vector<8x8xf32> -> vector<8x8xf32>
    %cst_19 = arith.constant 2.500000e-01 : f32
    %47 = vector.broadcast %cst_19 : f32 to vector<8x8xf32>
    %48 = arith.mulf %46, %47 : vector<8x8xf32>
    %49 = vector.broadcast %16 : vector<1x8xf32> to vector<8x8xf32>
    %50 = arith.addf %48, %49 : vector<8x8xf32>
    %cst_20 = arith.constant dense<0xFF800000> : vector<8xf32>
    %51 = vector.multi_reduction <maximumf>, %50, %cst_20 [1] : vector<8x8xf32> to vector<8xf32>
    %52 = vector.shape_cast %51 : vector<8xf32> to vector<8x1xf32>
    %53 = vector.broadcast %52 : vector<8x1xf32> to vector<8x8xf32>
    %54 = arith.subf %50, %53 : vector<8x8xf32>
    %55 = math.exp %54 : vector<8x8xf32>
    %cst_21 = arith.constant dense<0.000000e+00> : vector<8xf32>
    %56 = vector.multi_reduction <add>, %55, %cst_21 [1] : vector<8x8xf32> to vector<8xf32>
    %57 = vector.shape_cast %56 : vector<8xf32> to vector<8x1xf32>
    %58 = tpu.reciprocal %57 {approx = true} : vector<8x1xf32> -> vector<8x1xf32>
    %59 = vector.broadcast %58 : vector<8x1xf32> to vector<8x8xf32>
    %60 = arith.mulf %55, %59 : vector<8x8xf32>
    %61 = arith.truncf %60 : vector<8x8xf32> to vector<8x8xbf16>
    %62 = arith.truncf %43 : vector<8x16xf32> to vector<8x16xbf16>
    %cst_22 = arith.constant dense<0.000000e+00> : vector<8x16xf32>
    %63 = tpu.matmul %61, %62, %cst_22 {dimension_numbers = #tpu.dot_dimension_numbers<[1], [0], [0], [1], [0, 0, 1, 1], [], []>} : vector<8x8xbf16>, vector<8x16xbf16>, vector<8x16xf32> -> vector<8x16xf32>
    %c0_23 = arith.constant 0 : index
    %c16 = arith.constant 16 : index
    %64 = vector.load %arg19[%c0_23, %c16] : memref<32x32xf32, #tpu.memory_space<vmem>>, vector<8x16xf32>
    tpu.vector_store %arg19[%c0_23, %c16], %63 {strides = array<i32>} : memref<32x32xf32, #tpu.memory_space<vmem>>, vector<8x16xf32>,
    %c1 = arith.constant 1 : index
    %c0_24 = arith.constant 0 : index
    %c0_25 = arith.constant 0 : index
    %65 = vector.load %arg2[%c1, %c0_24, %c0_25] : memref<4x1x8xf32, #tpu.memory_space<vmem>>, vector<1x1x8xf32>
    %66 = vector.shape_cast %65 : vector<1x1x8xf32> to vector<1x8xf32>
    %67 = vector.extract_strided_slice %12 {offsets = [8, 0], sizes = [8, 16], strides = [1, 1]} : vector<32x32xf32> to vector<8x16xf32>
    %68 = vector.extract_strided_slice %13 {offsets = [8, 0], sizes = [8, 16], strides = [1, 1]} : vector<32x32xf32> to vector<8x16xf32>
    %69 = vector.extract_strided_slice %14 {offsets = [8, 0], sizes = [8, 16], strides = [1, 1]} : vector<32x32xf32> to vector<8x16xf32>
    %70 = arith.truncf %67 : vector<8x16xf32> to vector<8x16xbf16>
    %71 = arith.truncf %68 : vector<8x16xf32> to vector<8x16xbf16>
    %cst_26 = arith.constant dense<0.000000e+00> : vector<8x8xf32>
    %72 = tpu.matmul %70, %71, %cst_26 {dimension_numbers = #tpu.dot_dimension_numbers<[1], [1], [0], [0], [0, 0, 1, 0], [], []>} : vector<8x16xbf16>, vector<8x16xbf16>, vector<8x8xf32> -> vector<8x8xf32>
    %cst_27 = arith.constant 2.500000e-01 : f32
    %73 = vector.broadcast %cst_27 : f32 to vector<8x8xf32>
    %74 = arith.mulf %72, %73 : vector<8x8xf32>
    %75 = vector.broadcast %66 : vector<1x8xf32> to vector<8x8xf32>
    %76 = arith.addf %74, %75 : vector<8x8xf32>
    %cst_28 = arith.constant dense<0xFF800000> : vector<8xf32>
    %77 = vector.multi_reduction <maximumf>, %76, %cst_28 [1] : vector<8x8xf32> to vector<8xf32>
    %78 = vector.shape_cast %77 : vector<8xf32> to vector<8x1xf32>
    %79 = vector.broadcast %78 : vector<8x1xf32> to vector<8x8xf32>
    %80 = arith.subf %76, %79 : vector<8x8xf32>
    %81 = math.exp %80 : vector<8x8xf32>
    %cst_29 = arith.constant dense<0.000000e+00> : vector<8xf32>
    %82 = vector.multi_reduction <add>, %81, %cst_29 [1] : vector<8x8xf32> to vector<8xf32>
    %83 = vector.shape_cast %82 : vector<8xf32> to vector<8x1xf32>
    %84 = tpu.reciprocal %83 {approx = true} : vector<8x1xf32> -> vector<8x1xf32>
    %85 = vector.broadcast %84 : vector<8x1xf32> to vector<8x8xf32>
    %86 = arith.mulf %81, %85 : vector<8x8xf32>
    %87 = arith.truncf %86 : vector<8x8xf32> to vector<8x8xbf16>
    %88 = arith.truncf %69 : vector<8x16xf32> to vector<8x16xbf16>
    %cst_30 = arith.constant dense<0.000000e+00> : vector<8x16xf32>
    %89 = tpu.matmul %87, %88, %cst_30 {dimension_numbers = #tpu.dot_dimension_numbers<[1], [0], [0], [1], [0, 0, 1, 1], [], []>} : vector<8x8xbf16>, vector<8x16xbf16>, vector<8x16xf32> -> vector<8x16xf32>
    %c8 = arith.constant 8 : index
    %c0_31 = arith.constant 0 : index
    %90 = vector.load %arg19[%c8, %c0_31] : memref<32x32xf32, #tpu.memory_space<vmem>>, vector<8x16xf32>
    tpu.vector_store %arg19[%c8, %c0_31], %89 {strides = array<i32>} : memref<32x32xf32, #tpu.memory_space<vmem>>, vector<8x16xf32>,
    %91 = vector.extract_strided_slice %12 {offsets = [8, 16], sizes = [8, 16], strides = [1, 1]} : vector<32x32xf32> to vector<8x16xf32>
    %92 = vector.extract_strided_slice %13 {offsets = [8, 16], sizes = [8, 16], strides = [1, 1]} : vector<32x32xf32> to vector<8x16xf32>
    %93 = vector.extract_strided_slice %14 {offsets = [8, 16], sizes = [8, 16], strides = [1, 1]} : vector<32x32xf32> to vector<8x16xf32>
    %94 = arith.truncf %91 : vector<8x16xf32> to vector<8x16xbf16>
    %95 = arith.truncf %92 : vector<8x16xf32> to vector<8x16xbf16>
    %cst_32 = arith.constant dense<0.000000e+00> : vector<8x8xf32>
    %96 = tpu.matmul %94, %95, %cst_32 {dimension_numbers = #tpu.dot_dimension_numbers<[1], [1], [0], [0], [0, 0, 1, 0], [], []>} : vector<8x16xbf16>, vector<8x16xbf16>, vector<8x8xf32> -> vector<8x8xf32>
    %cst_33 = arith.constant 2.500000e-01 : f32
    %97 = vector.broadcast %cst_33 : f32 to vector<8x8xf32>
    %98 = arith.mulf %96, %97 : vector<8x8xf32>
    %99 = vector.broadcast %66 : vector<1x8xf32> to vector<8x8xf32>
    %100 = arith.addf %98, %99 : vector<8x8xf32>
    %cst_34 = arith.constant dense<0xFF800000> : vector<8xf32>
    %101 = vector.multi_reduction <maximumf>, %100, %cst_34 [1] : vector<8x8xf32> to vector<8xf32>
    %102 = vector.shape_cast %101 : vector<8xf32> to vector<8x1xf32>
    %103 = vector.broadcast %102 : vector<8x1xf32> to vector<8x8xf32>
    %104 = arith.subf %100, %103 : vector<8x8xf32>
    %105 = math.exp %104 : vector<8x8xf32>
    %cst_35 = arith.constant dense<0.000000e+00> : vector<8xf32>
    %106 = vector.multi_reduction <add>, %105, %cst_35 [1] : vector<8x8xf32> to vector<8xf32>
    %107 = vector.shape_cast %106 : vector<8xf32> to vector<8x1xf32>
    %108 = tpu.reciprocal %107 {approx = true} : vector<8x1xf32> -> vector<8x1xf32>
    %109 = vector.broadcast %108 : vector<8x1xf32> to vector<8x8xf32>
    %110 = arith.mulf %105, %109 : vector<8x8xf32>
    %111 = arith.truncf %110 : vector<8x8xf32> to vector<8x8xbf16>
    %112 = arith.truncf %93 : vector<8x16xf32> to vector<8x16xbf16>
    %cst_36 = arith.constant dense<0.000000e+00> : vector<8x16xf32>
    %113 = tpu.matmul %111, %112, %cst_36 {dimension_numbers = #tpu.dot_dimension_numbers<[1], [0], [0], [1], [0, 0, 1, 1], [], []>} : vector<8x8xbf16>, vector<8x16xbf16>, vector<8x16xf32> -> vector<8x16xf32>
    %c8_37 = arith.constant 8 : index
    %c16_38 = arith.constant 16 : index
    %114 = vector.load %arg19[%c8_37, %c16_38] : memref<32x32xf32, #tpu.memory_space<vmem>>, vector<8x16xf32>
    tpu.vector_store %arg19[%c8_37, %c16_38], %113 {strides = array<i32>} : memref<32x32xf32, #tpu.memory_space<vmem>>, vector<8x16xf32>,
    %c2 = arith.constant 2 : index
    %c0_39 = arith.constant 0 : index
    %c0_40 = arith.constant 0 : index
    %115 = vector.load %arg2[%c2, %c0_39, %c0_40] : memref<4x1x8xf32, #tpu.memory_space<vmem>>, vector<1x1x8xf32>
    %116 = vector.shape_cast %115 : vector<1x1x8xf32> to vector<1x8xf32>
    %117 = vector.extract_strided_slice %12 {offsets = [16, 0], sizes = [8, 16], strides = [1, 1]} : vector<32x32xf32> to vector<8x16xf32>
    %118 = vector.extract_strided_slice %13 {offsets = [16, 0], sizes = [8, 16], strides = [1, 1]} : vector<32x32xf32> to vector<8x16xf32>
    %119 = vector.extract_strided_slice %14 {offsets = [16, 0], sizes = [8, 16], strides = [1, 1]} : vector<32x32xf32> to vector<8x16xf32>
    %120 = arith.truncf %117 : vector<8x16xf32> to vector<8x16xbf16>
    %121 = arith.truncf %118 : vector<8x16xf32> to vector<8x16xbf16>
    %cst_41 = arith.constant dense<0.000000e+00> : vector<8x8xf32>
    %122 = tpu.matmul %120, %121, %cst_41 {dimension_numbers = #tpu.dot_dimension_numbers<[1], [1], [0], [0], [0, 0, 1, 0], [], []>} : vector<8x16xbf16>, vector<8x16xbf16>, vector<8x8xf32> -> vector<8x8xf32>
    %cst_42 = arith.constant 2.500000e-01 : f32
    %123 = vector.broadcast %cst_42 : f32 to vector<8x8xf32>
    %124 = arith.mulf %122, %123 : vector<8x8xf32>
    %125 = vector.broadcast %116 : vector<1x8xf32> to vector<8x8xf32>
    %126 = arith.addf %124, %125 : vector<8x8xf32>
    %cst_43 = arith.constant dense<0xFF800000> : vector<8xf32>
    %127 = vector.multi_reduction <maximumf>, %126, %cst_43 [1] : vector<8x8xf32> to vector<8xf32>
    %128 = vector.shape_cast %127 : vector<8xf32> to vector<8x1xf32>
    %129 = vector.broadcast %128 : vector<8x1xf32> to vector<8x8xf32>
    %130 = arith.subf %126, %129 : vector<8x8xf32>
    %131 = math.exp %130 : vector<8x8xf32>
    %cst_44 = arith.constant dense<0.000000e+00> : vector<8xf32>
    %132 = vector.multi_reduction <add>, %131, %cst_44 [1] : vector<8x8xf32> to vector<8xf32>
    %133 = vector.shape_cast %132 : vector<8xf32> to vector<8x1xf32>
    %134 = tpu.reciprocal %133 {approx = true} : vector<8x1xf32> -> vector<8x1xf32>
    %135 = vector.broadcast %134 : vector<8x1xf32> to vector<8x8xf32>
    %136 = arith.mulf %131, %135 : vector<8x8xf32>
    %137 = arith.truncf %136 : vector<8x8xf32> to vector<8x8xbf16>
    %138 = arith.truncf %119 : vector<8x16xf32> to vector<8x16xbf16>
    %cst_45 = arith.constant dense<0.000000e+00> : vector<8x16xf32>
    %139 = tpu.matmul %137, %138, %cst_45 {dimension_numbers = #tpu.dot_dimension_numbers<[1], [0], [0], [1], [0, 0, 1, 1], [], []>} : vector<8x8xbf16>, vector<8x16xbf16>, vector<8x16xf32> -> vector<8x16xf32>
    %c16_46 = arith.constant 16 : index
    %c0_47 = arith.constant 0 : index
    %140 = vector.load %arg19[%c16_46, %c0_47] : memref<32x32xf32, #tpu.memory_space<vmem>>, vector<8x16xf32>
    tpu.vector_store %arg19[%c16_46, %c0_47], %139 {strides = array<i32>} : memref<32x32xf32, #tpu.memory_space<vmem>>, vector<8x16xf32>,
    %141 = vector.extract_strided_slice %12 {offsets = [16, 16], sizes = [8, 16], strides = [1, 1]} : vector<32x32xf32> to vector<8x16xf32>
    %142 = vector.extract_strided_slice %13 {offsets = [16, 16], sizes = [8, 16], strides = [1, 1]} : vector<32x32xf32> to vector<8x16xf32>
    %143 = vector.extract_strided_slice %14 {offsets = [16, 16], sizes = [8, 16], strides = [1, 1]} : vector<32x32xf32> to vector<8x16xf32>
    %144 = arith.truncf %141 : vector<8x16xf32> to vector<8x16xbf16>
    %145 = arith.truncf %142 : vector<8x16xf32> to vector<8x16xbf16>
    %cst_48 = arith.constant dense<0.000000e+00> : vector<8x8xf32>
    %146 = tpu.matmul %144, %145, %cst_48 {dimension_numbers = #tpu.dot_dimension_numbers<[1], [1], [0], [0], [0, 0, 1, 0], [], []>} : vector<8x16xbf16>, vector<8x16xbf16>, vector<8x8xf32> -> vector<8x8xf32>
    %cst_49 = arith.constant 2.500000e-01 : f32
    %147 = vector.broadcast %cst_49 : f32 to vector<8x8xf32>
    %148 = arith.mulf %146, %147 : vector<8x8xf32>
    %149 = vector.broadcast %116 : vector<1x8xf32> to vector<8x8xf32>
    %150 = arith.addf %148, %149 : vector<8x8xf32>
    %cst_50 = arith.constant dense<0xFF800000> : vector<8xf32>
    %151 = vector.multi_reduction <maximumf>, %150, %cst_50 [1] : vector<8x8xf32> to vector<8xf32>
    %152 = vector.shape_cast %151 : vector<8xf32> to vector<8x1xf32>
    %153 = vector.broadcast %152 : vector<8x1xf32> to vector<8x8xf32>
    %154 = arith.subf %150, %153 : vector<8x8xf32>
    %155 = math.exp %154 : vector<8x8xf32>
    %cst_51 = arith.constant dense<0.000000e+00> : vector<8xf32>
    %156 = vector.multi_reduction <add>, %155, %cst_51 [1] : vector<8x8xf32> to vector<8xf32>
    %157 = vector.shape_cast %156 : vector<8xf32> to vector<8x1xf32>
    %158 = tpu.reciprocal %157 {approx = true} : vector<8x1xf32> -> vector<8x1xf32>
    %159 = vector.broadcast %158 : vector<8x1xf32> to vector<8x8xf32>
    %160 = arith.mulf %155, %159 : vector<8x8xf32>
    %161 = arith.truncf %160 : vector<8x8xf32> to vector<8x8xbf16>
    %162 = arith.truncf %143 : vector<8x16xf32> to vector<8x16xbf16>
    %cst_52 = arith.constant dense<0.000000e+00> : vector<8x16xf32>
    %163 = tpu.matmul %161, %162, %cst_52 {dimension_numbers = #tpu.dot_dimension_numbers<[1], [0], [0], [1], [0, 0, 1, 1], [], []>} : vector<8x8xbf16>, vector<8x16xbf16>, vector<8x16xf32> -> vector<8x16xf32>
    %c16_53 = arith.constant 16 : index
    %c16_54 = arith.constant 16 : index
    %164 = vector.load %arg19[%c16_53, %c16_54] : memref<32x32xf32, #tpu.memory_space<vmem>>, vector<8x16xf32>
    tpu.vector_store %arg19[%c16_53, %c16_54], %163 {strides = array<i32>} : memref<32x32xf32, #tpu.memory_space<vmem>>, vector<8x16xf32>,
    %c3 = arith.constant 3 : index
    %c0_55 = arith.constant 0 : index
    %c0_56 = arith.constant 0 : index
    %165 = vector.load %arg2[%c3, %c0_55, %c0_56] : memref<4x1x8xf32, #tpu.memory_space<vmem>>, vector<1x1x8xf32>
    %166 = vector.shape_cast %165 : vector<1x1x8xf32> to vector<1x8xf32>
    %167 = vector.extract_strided_slice %12 {offsets = [24, 0], sizes = [8, 16], strides = [1, 1]} : vector<32x32xf32> to vector<8x16xf32>
    %168 = vector.extract_strided_slice %13 {offsets = [24, 0], sizes = [8, 16], strides = [1, 1]} : vector<32x32xf32> to vector<8x16xf32>
    %169 = vector.extract_strided_slice %14 {offsets = [24, 0], sizes = [8, 16], strides = [1, 1]} : vector<32x32xf32> to vector<8x16xf32>
    %170 = arith.truncf %167 : vector<8x16xf32> to vector<8x16xbf16>
    %171 = arith.truncf %168 : vector<8x16xf32> to vector<8x16xbf16>
    %cst_57 = arith.constant dense<0.000000e+00> : vector<8x8xf32>
    %172 = tpu.matmul %170, %171, %cst_57 {dimension_numbers = #tpu.dot_dimension_numbers<[1], [1], [0], [0], [0, 0, 1, 0], [], []>} : vector<8x16xbf16>, vector<8x16xbf16>, vector<8x8xf32> -> vector<8x8xf32>
    %cst_58 = arith.constant 2.500000e-01 : f32
    %173 = vector.broadcast %cst_58 : f32 to vector<8x8xf32>
    %174 = arith.mulf %172, %173 : vector<8x8xf32>
    %175 = vector.broadcast %166 : vector<1x8xf32> to vector<8x8xf32>
    %176 = arith.addf %174, %175 : vector<8x8xf32>
    %cst_59 = arith.constant dense<0xFF800000> : vector<8xf32>
    %177 = vector.multi_reduction <maximumf>, %176, %cst_59 [1] : vector<8x8xf32> to vector<8xf32>
    %178 = vector.shape_cast %177 : vector<8xf32> to vector<8x1xf32>
    %179 = vector.broadcast %178 : vector<8x1xf32> to vector<8x8xf32>
    %180 = arith.subf %176, %179 : vector<8x8xf32>
    %181 = math.exp %180 : vector<8x8xf32>
    %cst_60 = arith.constant dense<0.000000e+00> : vector<8xf32>
    %182 = vector.multi_reduction <add>, %181, %cst_60 [1] : vector<8x8xf32> to vector<8xf32>
    %183 = vector.shape_cast %182 : vector<8xf32> to vector<8x1xf32>
    %184 = tpu.reciprocal %183 {approx = true} : vector<8x1xf32> -> vector<8x1xf32>
    %185 = vector.broadcast %184 : vector<8x1xf32> to vector<8x8xf32>
    %186 = arith.mulf %181, %185 : vector<8x8xf32>
    %187 = arith.truncf %186 : vector<8x8xf32> to vector<8x8xbf16>
    %188 = arith.truncf %169 : vector<8x16xf32> to vector<8x16xbf16>
    %cst_61 = arith.constant dense<0.000000e+00> : vector<8x16xf32>
    %189 = tpu.matmul %187, %188, %cst_61 {dimension_numbers = #tpu.dot_dimension_numbers<[1], [0], [0], [1], [0, 0, 1, 1], [], []>} : vector<8x8xbf16>, vector<8x16xbf16>, vector<8x16xf32> -> vector<8x16xf32>
    %c24 = arith.constant 24 : index
    %c0_62 = arith.constant 0 : index
    %190 = vector.load %arg19[%c24, %c0_62] : memref<32x32xf32, #tpu.memory_space<vmem>>, vector<8x16xf32>
    tpu.vector_store %arg19[%c24, %c0_62], %189 {strides = array<i32>} : memref<32x32xf32, #tpu.memory_space<vmem>>, vector<8x16xf32>,
    %191 = vector.extract_strided_slice %12 {offsets = [24, 16], sizes = [8, 16], strides = [1, 1]} : vector<32x32xf32> to vector<8x16xf32>
    %192 = vector.extract_strided_slice %13 {offsets = [24, 16], sizes = [8, 16], strides = [1, 1]} : vector<32x32xf32> to vector<8x16xf32>
    %193 = vector.extract_strided_slice %14 {offsets = [24, 16], sizes = [8, 16], strides = [1, 1]} : vector<32x32xf32> to vector<8x16xf32>
    %194 = arith.truncf %191 : vector<8x16xf32> to vector<8x16xbf16>
    %195 = arith.truncf %192 : vector<8x16xf32> to vector<8x16xbf16>
    %cst_63 = arith.constant dense<0.000000e+00> : vector<8x8xf32>
    %196 = tpu.matmul %194, %195, %cst_63 {dimension_numbers = #tpu.dot_dimension_numbers<[1], [1], [0], [0], [0, 0, 1, 0], [], []>} : vector<8x16xbf16>, vector<8x16xbf16>, vector<8x8xf32> -> vector<8x8xf32>
    %cst_64 = arith.constant 2.500000e-01 : f32
    %197 = vector.broadcast %cst_64 : f32 to vector<8x8xf32>
    %198 = arith.mulf %196, %197 : vector<8x8xf32>
    %199 = vector.broadcast %166 : vector<1x8xf32> to vector<8x8xf32>
    %200 = arith.addf %198, %199 : vector<8x8xf32>
    %cst_65 = arith.constant dense<0xFF800000> : vector<8xf32>
    %201 = vector.multi_reduction <maximumf>, %200, %cst_65 [1] : vector<8x8xf32> to vector<8xf32>
    %202 = vector.shape_cast %201 : vector<8xf32> to vector<8x1xf32>
    %203 = vector.broadcast %202 : vector<8x1xf32> to vector<8x8xf32>
    %204 = arith.subf %200, %203 : vector<8x8xf32>
    %205 = math.exp %204 : vector<8x8xf32>
    %cst_66 = arith.constant dense<0.000000e+00> : vector<8xf32>
    %206 = vector.multi_reduction <add>, %205, %cst_66 [1] : vector<8x8xf32> to vector<8xf32>
    %207 = vector.shape_cast %206 : vector<8xf32> to vector<8x1xf32>
    %208 = tpu.reciprocal %207 {approx = true} : vector<8x1xf32> -> vector<8x1xf32>
    %209 = vector.broadcast %208 : vector<8x1xf32> to vector<8x8xf32>
    %210 = arith.mulf %205, %209 : vector<8x8xf32>
    %211 = arith.truncf %210 : vector<8x8xf32> to vector<8x8xbf16>
    %212 = arith.truncf %193 : vector<8x16xf32> to vector<8x16xbf16>
    %cst_67 = arith.constant dense<0.000000e+00> : vector<8x16xf32>
    %213 = tpu.matmul %211, %212, %cst_67 {dimension_numbers = #tpu.dot_dimension_numbers<[1], [0], [0], [1], [0, 0, 1, 1], [], []>} : vector<8x8xbf16>, vector<8x16xbf16>, vector<8x16xf32> -> vector<8x16xf32>
    %c24_68 = arith.constant 24 : index
    %c16_69 = arith.constant 16 : index
    %214 = vector.load %arg19[%c24_68, %c16_69] : memref<32x32xf32, #tpu.memory_space<vmem>>, vector<8x16xf32>
    tpu.vector_store %arg19[%c24_68, %c16_69], %213 {strides = array<i32>} : memref<32x32xf32, #tpu.memory_space<vmem>>, vector<8x16xf32>,
    %c0_70 = arith.constant 0 : index
    %c0_71 = arith.constant 0 : index
    %215 = vector.load %arg19[%c0_70, %c0_71] : memref<32x32xf32, #tpu.memory_space<vmem>>, vector<32x32xf32>
    %c0_72 = arith.constant 0 : index
    %c0_73 = arith.constant 0 : index
    %c0_74 = arith.constant 0 : index
    %216 = vector.load %arg7[%c0_72, %c0_73, %c0_74] : memref<1x32x32xbf16, #tpu.memory_space<vmem>>, vector<1x32x32xbf16>
    %217 = vector.shape_cast %216 : vector<1x32x32xbf16> to vector<32x32xbf16>
    %218 = arith.truncf %215 : vector<32x32xf32> to vector<32x32xbf16>
    %cst_75 = arith.constant dense<0.000000e+00> : vector<32x32xf32>
    %219 = tpu.matmul %218, %217, %cst_75 {dimension_numbers = #tpu.dot_dimension_numbers<[1], [0], [0], [1], [0, 0, 1, 1], [], []>} : vector<32x32xbf16>, vector<32x32xbf16>, vector<32x32xf32> -> vector<32x32xf32>
    %c0_76 = arith.constant 0 : index
    %c0_77 = arith.constant 0 : index
    %c0_78 = arith.constant 0 : index
    %220 = vector.load %arg8[%c0_76, %c0_77, %c0_78] : memref<1x1x32xf32, #tpu.memory_space<vmem>>, vector<1x1x32xf32>
    %221 = vector.shape_cast %220 : vector<1x1x32xf32> to vector<1x32xf32>
    %222 = vector.broadcast %221 : vector<1x32xf32> to vector<32x32xf32>
    %223 = arith.addf %219, %222 : vector<32x32xf32>
    %224 = arith.addf %223, %3 : vector<32x32xf32>
    %c0_79 = arith.constant 0 : index
    %c0_80 = arith.constant 0 : index
    %c0_81 = arith.constant 0 : index
    %225 = vector.load %arg9[%c0_79, %c0_80, %c0_81] : memref<1x1x32xf32, #tpu.memory_space<vmem>>, vector<1x1x32xf32>
    %226 = vector.shape_cast %225 : vector<1x1x32xf32> to vector<1x32xf32>
    %c0_82 = arith.constant 0 : index
    %c0_83 = arith.constant 0 : index
    %c0_84 = arith.constant 0 : index
    %227 = vector.load %arg10[%c0_82, %c0_83, %c0_84] : memref<1x1x32xf32, #tpu.memory_space<vmem>>, vector<1x1x32xf32>
    %228 = vector.shape_cast %227 : vector<1x1x32xf32> to vector<1x32xf32>
    %cst_85 = arith.constant dense<0.000000e+00> : vector<32xf32>
    %229 = vector.multi_reduction <add>, %224, %cst_85 [1] : vector<32x32xf32> to vector<32xf32>
    %230 = vector.shape_cast %229 : vector<32xf32> to vector<32x1xf32>
    %cst_86 = arith.constant 3.200000e+01 : f32
    %231 = vector.broadcast %cst_86 : f32 to vector<32x1xf32>
    %232 = arith.divf %230, %231 : vector<32x1xf32>
    %233 = vector.broadcast %232 : vector<32x1xf32> to vector<32x32xf32>
    %234 = arith.subf %224, %233 : vector<32x32xf32>
    %235 = arith.mulf %234, %234 : vector<32x32xf32>
    %cst_87 = arith.constant dense<0.000000e+00> : vector<32xf32>
    %236 = vector.multi_reduction <add>, %235, %cst_87 [1] : vector<32x32xf32> to vector<32xf32>
    %237 = vector.shape_cast %236 : vector<32xf32> to vector<32x1xf32>
    %cst_88 = arith.constant 3.200000e+01 : f32
    %238 = vector.broadcast %cst_88 : f32 to vector<32x1xf32>
    %239 = arith.divf %237, %238 : vector<32x1xf32>
    %cst_89 = arith.constant 9.99999996E-13 : f32
    %240 = vector.broadcast %cst_89 : f32 to vector<32x1xf32>
    %241 = arith.addf %239, %240 : vector<32x1xf32>
    %242 = math.rsqrt %241 : vector<32x1xf32>
    %243 = vector.broadcast %242 : vector<32x1xf32> to vector<32x32xf32>
    %244 = arith.mulf %234, %243 : vector<32x32xf32>
    %245 = vector.broadcast %226 : vector<1x32xf32> to vector<32x32xf32>
    %246 = arith.mulf %244, %245 : vector<32x32xf32>
    %247 = vector.broadcast %228 : vector<1x32xf32> to vector<32x32xf32>
    %248 = arith.addf %246, %247 : vector<32x32xf32>
    %c0_90 = arith.constant 0 : index
    %c0_91 = arith.constant 0 : index
    %c0_92 = arith.constant 0 : index
    %249 = vector.load %arg11[%c0_90, %c0_91, %c0_92] : memref<1x32x64xbf16, #tpu.memory_space<vmem>>, vector<1x32x64xbf16>
    %250 = vector.shape_cast %249 : vector<1x32x64xbf16> to vector<32x64xbf16>
    %251 = arith.truncf %248 : vector<32x32xf32> to vector<32x32xbf16>
    %cst_93 = arith.constant dense<0.000000e+00> : vector<32x64xf32>
    %252 = tpu.matmul %251, %250, %cst_93 {dimension_numbers = #tpu.dot_dimension_numbers<[1], [0], [0], [1], [0, 0, 1, 1], [], []>} : vector<32x32xbf16>, vector<32x64xbf16>, vector<32x64xf32> -> vector<32x64xf32>
    %c0_94 = arith.constant 0 : index
    %c0_95 = arith.constant 0 : index
    %c0_96 = arith.constant 0 : index
    %253 = vector.load %arg12[%c0_94, %c0_95, %c0_96] : memref<1x1x64xf32, #tpu.memory_space<vmem>>, vector<1x1x64xf32>
    %254 = vector.shape_cast %253 : vector<1x1x64xf32> to vector<1x64xf32>
    %255 = vector.broadcast %254 : vector<1x64xf32> to vector<32x64xf32>
    %256 = arith.addf %252, %255 : vector<32x64xf32>
    %cst_97 = arith.constant 5.000000e-01 : f32
    %257 = vector.broadcast %cst_97 : f32 to vector<32x64xf32>
    %258 = arith.mulf %257, %256 : vector<32x64xf32>
    %cst_98 = arith.constant 4.471500e-02 : f32
    %259 = vector.broadcast %cst_98 : f32 to vector<32x64xf32>
    %260 = arith.mulf %259, %256 : vector<32x64xf32>
    %261 = arith.mulf %260, %256 : vector<32x64xf32>
    %262 = arith.mulf %261, %256 : vector<32x64xf32>
    %263 = arith.addf %256, %262 : vector<32x64xf32>
    %cst_99 = arith.constant 0.797884583 : f32
    %264 = vector.broadcast %cst_99 : f32 to vector<32x64xf32>
    %265 = arith.mulf %264, %263 : vector<32x64xf32>
    %266 = math.tanh %265 : vector<32x64xf32>
    %cst_100 = arith.constant 1.000000e+00 : f32
    %267 = vector.broadcast %cst_100 : f32 to vector<32x64xf32>
    %268 = arith.addf %267, %266 : vector<32x64xf32>
    %269 = arith.mulf %258, %268 : vector<32x64xf32>
    %c0_101 = arith.constant 0 : index
    %c0_102 = arith.constant 0 : index
    %c0_103 = arith.constant 0 : index
    %270 = vector.load %arg13[%c0_101, %c0_102, %c0_103] : memref<1x64x32xbf16, #tpu.memory_space<vmem>>, vector<1x64x32xbf16>
    %271 = vector.shape_cast %270 : vector<1x64x32xbf16> to vector<64x32xbf16>
    %272 = arith.truncf %269 : vector<32x64xf32> to vector<32x64xbf16>
    %cst_104 = arith.constant dense<0.000000e+00> : vector<32x32xf32>
    %273 = tpu.matmul %272, %271, %cst_104 {dimension_numbers = #tpu.dot_dimension_numbers<[1], [0], [0], [1], [0, 0, 1, 1], [], []>} : vector<32x64xbf16>, vector<64x32xbf16>, vector<32x32xf32> -> vector<32x32xf32>
    %c0_105 = arith.constant 0 : index
    %c0_106 = arith.constant 0 : index
    %c0_107 = arith.constant 0 : index
    %274 = vector.load %arg14[%c0_105, %c0_106, %c0_107] : memref<1x1x32xf32, #tpu.memory_space<vmem>>, vector<1x1x32xf32>
    %275 = vector.shape_cast %274 : vector<1x1x32xf32> to vector<1x32xf32>
    %276 = vector.broadcast %275 : vector<1x32xf32> to vector<32x32xf32>
    %277 = arith.addf %273, %276 : vector<32x32xf32>
    %278 = arith.addf %277, %248 : vector<32x32xf32>
    %c0_108 = arith.constant 0 : index
    %c0_109 = arith.constant 0 : index
    %c0_110 = arith.constant 0 : index
    %279 = vector.load %arg15[%c0_108, %c0_109, %c0_110] : memref<1x1x32xf32, #tpu.memory_space<vmem>>, vector<1x1x32xf32>
    %280 = vector.shape_cast %279 : vector<1x1x32xf32> to vector<1x32xf32>
    %c0_111 = arith.constant 0 : index
    %c0_112 = arith.constant 0 : index
    %c0_113 = arith.constant 0 : index
    %281 = vector.load %arg16[%c0_111, %c0_112, %c0_113] : memref<1x1x32xf32, #tpu.memory_space<vmem>>, vector<1x1x32xf32>
    %282 = vector.shape_cast %281 : vector<1x1x32xf32> to vector<1x32xf32>
    %cst_114 = arith.constant dense<0.000000e+00> : vector<32xf32>
    %283 = vector.multi_reduction <add>, %278, %cst_114 [1] : vector<32x32xf32> to vector<32xf32>
    %284 = vector.shape_cast %283 : vector<32xf32> to vector<32x1xf32>
    %cst_115 = arith.constant 3.200000e+01 : f32
    %285 = vector.broadcast %cst_115 : f32 to vector<32x1xf32>
    %286 = arith.divf %284, %285 : vector<32x1xf32>
    %287 = vector.broadcast %286 : vector<32x1xf32> to vector<32x32xf32>
    %288 = arith.subf %278, %287 : vector<32x32xf32>
    %289 = arith.mulf %288, %288 : vector<32x32xf32>
    %cst_116 = arith.constant dense<0.000000e+00> : vector<32xf32>
    %290 = vector.multi_reduction <add>, %289, %cst_116 [1] : vector<32x32xf32> to vector<32xf32>
    %291 = vector.shape_cast %290 : vector<32xf32> to vector<32x1xf32>
    %cst_117 = arith.constant 3.200000e+01 : f32
    %292 = vector.broadcast %cst_117 : f32 to vector<32x1xf32>
    %293 = arith.divf %291, %292 : vector<32x1xf32>
    %cst_118 = arith.constant 9.99999996E-13 : f32
    %294 = vector.broadcast %cst_118 : f32 to vector<32x1xf32>
    %295 = arith.addf %293, %294 : vector<32x1xf32>
    %296 = math.rsqrt %295 : vector<32x1xf32>
    %297 = vector.broadcast %296 : vector<32x1xf32> to vector<32x32xf32>
    %298 = arith.mulf %288, %297 : vector<32x32xf32>
    %299 = vector.broadcast %280 : vector<1x32xf32> to vector<32x32xf32>
    %300 = arith.mulf %298, %299 : vector<32x32xf32>
    %301 = vector.broadcast %282 : vector<1x32xf32> to vector<32x32xf32>
    %302 = arith.addf %300, %301 : vector<32x32xf32>
    %c0_119 = arith.constant 0 : index
    %c0_120 = arith.constant 0 : index
    %303 = vector.load %arg18[%c0_119, %c0_120] : memref<32x32xf32, #tpu.memory_space<vmem>>, vector<32x32xf32>
    tpu.vector_store %arg18[%c0_119, %c0_120], %302 {strides = array<i32>} : memref<32x32xf32, #tpu.memory_space<vmem>>, vector<32x32xf32>,
    %c0_121 = arith.constant 0 : index
    %c0_122 = arith.constant 0 : index
    %304 = vector.load %arg17[%c0_121, %c0_122] : memref<32x32xf32, #tpu.memory_space<vmem>>, vector<32x32xf32>
    tpu.vector_store %arg17[%c0_121, %c0_122], %302 {strides = array<i32>} : memref<32x32xf32, #tpu.memory_space<vmem>>, vector<32x32xf32>,
    return
  }
  func.func @transform_0(%arg0: i32) -> (i32, i32) {
    %c0_i32 = arith.constant 0 : i32
    %c0_i32_0 = arith.constant 0 : i32
    %c0_i32_1 = arith.constant 0 : i32
    return %c0_i32, %c0_i32_0 : i32, i32
  }
  func.func @transform_1(%arg0: i32) -> (i32, i32, i32) {
    %c0_i32 = arith.constant 0 : i32
    %c0_i32_0 = arith.constant 0 : i32
    %c0_i32_1 = arith.constant 0 : i32
    %c0_i32_2 = arith.constant 0 : i32
    return %c0_i32, %c0_i32_0, %c0_i32_1 : i32, i32, i32
  }
  func.func @transform_2(%arg0: i32) -> (i32, i32) {
    %c0_i32 = arith.constant 0 : i32
    %c0_i32_0 = arith.constant 0 : i32
    %c0_i32_1 = arith.constant 0 : i32
    return %c0_i32, %c0_i32_0 : i32, i32
  }
  func.func @transform_3(%arg0: i32) -> (i32, i32) {
    %c0_i32 = arith.constant 0 : i32
    %c0_i32_0 = arith.constant 0 : i32
    %c0_i32_1 = arith.constant 0 : i32
    return %c0_i32, %c0_i32_0 : i32, i32
  }
  func.func @transform_4(%arg0: i32) -> (i32, i32, i32) {
    %c0_i32 = arith.constant 0 : i32
    %c0_i32_0 = arith.constant 0 : i32
    %c0_i32_1 = arith.constant 0 : i32
    return %arg0, %c0_i32, %c0_i32_0 : i32, i32, i32
  }
  func.func @transform_5(%arg0: i32) -> (i32, i32, i32) {
    %c0_i32 = arith.constant 0 : i32
    %c0_i32_0 = arith.constant 0 : i32
    %c0_i32_1 = arith.constant 0 : i32
    return %arg0, %c0_i32, %c0_i32_0 : i32, i32, i32
  }
  func.func @transform_6(%arg0: i32) -> (i32, i32, i32) {
    %c0_i32 = arith.constant 0 : i32
    %c0_i32_0 = arith.constant 0 : i32
    %c0_i32_1 = arith.constant 0 : i32
    return %arg0, %c0_i32, %c0_i32_0 : i32, i32, i32
  }
  func.func @transform_7(%arg0: i32) -> (i32, i32, i32) {
    %c0_i32 = arith.constant 0 : i32
    %c0_i32_0 = arith.constant 0 : i32
    %c0_i32_1 = arith.constant 0 : i32
    return %arg0, %c0_i32, %c0_i32_0 : i32, i32, i32
  }
  func.func @transform_8(%arg0: i32) -> (i32, i32, i32) {
    %c0_i32 = arith.constant 0 : i32
    %c0_i32_0 = arith.constant 0 : i32
    %c0_i32_1 = arith.constant 0 : i32
    return %arg0, %c0_i32, %c0_i32_0 : i32, i32, i32
  }
  func.func @transform_9(%arg0: i32) -> (i32, i32, i32) {
    %c0_i32 = arith.constant 0 : i32
    %c0_i32_0 = arith.constant 0 : i32
    %c0_i32_1 = arith.constant 0 : i32
    return %arg0, %c0_i32, %c0_i32_0 : i32, i32, i32
  }
  func.func @transform_10(%arg0: i32) -> (i32, i32, i32) {
    %c0_i32 = arith.constant 0 : i32
    %c0_i32_0 = arith.constant 0 : i32
    %c0_i32_1 = arith.constant 0 : i32
    return %arg0, %c0_i32, %c0_i32_0 : i32, i32, i32
  }
  func.func @transform_11(%arg0: i32) -> (i32, i32, i32) {
    %c0_i32 = arith.constant 0 : i32
    %c0_i32_0 = arith.constant 0 : i32
    %c0_i32_1 = arith.constant 0 : i32
    return %arg0, %c0_i32, %c0_i32_0 : i32, i32, i32
  }
  func.func @transform_12(%arg0: i32) -> (i32, i32, i32) {
    %c0_i32 = arith.constant 0 : i32
    %c0_i32_0 = arith.constant 0 : i32
    %c0_i32_1 = arith.constant 0 : i32
    return %arg0, %c0_i32, %c0_i32_0 : i32, i32, i32
  }
  func.func @transform_13(%arg0: i32) -> (i32, i32, i32) {
    %c0_i32 = arith.constant 0 : i32
    %c0_i32_0 = arith.constant 0 : i32
    %c0_i32_1 = arith.constant 0 : i32
    return %arg0, %c0_i32, %c0_i32_0 : i32, i32, i32
  }
  func.func @transform_14(%arg0: i32) -> (i32, i32, i32) {
    %c0_i32 = arith.constant 0 : i32
    %c0_i32_0 = arith.constant 0 : i32
    %c0_i32_1 = arith.constant 0 : i32
    return %arg0, %c0_i32, %c0_i32_0 : i32, i32, i32
  }
  func.func @transform_15(%arg0: i32) -> (i32, i32, i32) {
    %c0_i32 = arith.constant 0 : i32
    %c0_i32_0 = arith.constant 0 : i32
    %c0_i32_1 = arith.constant 0 : i32
    return %arg0, %c0_i32, %c0_i32_0 : i32, i32, i32
  }
  func.func @transform_16(%arg0: i32) -> (i32, i32) {
    %c0_i32 = arith.constant 0 : i32
    %c0_i32_0 = arith.constant 0 : i32
    %c0_i32_1 = arith.constant 0 : i32
    return %c0_i32, %c0_i32_0 : i32, i32
  }
}

</mosaic_0001>

<bundles_post_ra>
// kernel: multiple_choice_forward.3
= control target key start
LH: loop header
LB: loop body
LE: loop exit
PB: predicated region body
PF: predicated region fallthrough
CT: control target
= control target key end

     0   :  { %s449_s0 = inlined_call_operand.vmem [shape: f32[2,2,32], index: 0, kind: input, shape index: {}]   ;;  %s450_s1 = inlined_call_operand.vmem [shape: bf16[32,32], index: 1, kind: input, shape index: {}]   ;;  %s451_s2 = inlined_call_operand.vmem [shape: f32[1,32], index: 2, kind: input, shape index: {}]   ;;  %s452_s3 = inlined_call_operand.vmem [shape: f32[1,32], index: 3, kind: input, shape index: {}]   ;;  %s453_s4 = inlined_call_operand.<no memory space> [shape: f32[1,1], index: 4, kind: input, shape index: {}]   ;;  %s454_s5 = inlined_call_operand.vmem [shape: s32[2], index: 5, kind: input, shape index: {}]   ;;  %s455_s6 = inlined_call_operand.vmem [shape: f32[2,2,1], index: 6, kind: output, shape index: {0}]   ;;  %s456_s7 = inlined_call_operand.hbm [shape: f32[1,1], index: 7, kind: output, shape index: {1}]  }
   0x1   :  { %v13_v0 = vstv %s453_s4 }
   0x2   :  { %14 = vst [vmem:[#allocation2] sm:$0x1] %v13_v0 }
   0x3   :  { %15 = vsyncpa [#allocation5], 0 }
   0x4   :  { %16 = vsyncpa [#allocation4], 0  ;;  %s33_s28 = sshll.u32 %s454_s5, 4  ;;  %s34_s28 = int_to_ptr.vmem [resolvable:$true] %s33_s28 }
   0x5   :  { %s328_s29 = scalar_lea.vmem %s34_s28, 16  ;;  %p333_p1 = scmp.lt.s32.totalorder %s34_s28, %s34_s28 }
   0x6   :  { %p329_p0 = scmp.ne.s32.totalorder %s34_s28, %s328_s29  ;;  %p334_p2 = scmp.lt.s32.totalorder %s328_s29, %s328_s29 }
   0x8   :  { %p335_p3 = por %p334_p2, %p333_p1 }
   0xa   :  { %p336_p4 = pnand %p335_p3, %p329_p0 }
   0xc   :  { %339 = shalt.err (!%p336_p4)
}
   0xd   :  { %s364_s30 = smov [#allocation3]  }
   0xe   :  { %36 = dma.vmem_to_smem %s34_s28, 16, %s364_s30, [#allocation5]  }
   0xf   :  { %360 = dma.done.wait [#allocation5], 16  }
  0x10   :  { %361 = vsyncadd [#allocation5], 4294967280 }
  0x11   :  { %40 = sfence }
  0x12   :  { %v314_v1 = vld [vmem:[%s450_s1 + $0x8] sm:$0xff]   ;;  %v365_v2 = vmov 0.0   ;;  %v315_v3 = vld [vmem:[%s450_s1] sm:$0xff]   ;;  %vm366_vm0 = vmmov 0   ;;  %vm71_vm1 = vcmask 261120   ;;  %vm123_vm2 = vcmask 254976  }
  0x13   :  { %294 = vmatprep.subr.bf16.mxu0 %v365_v2  ;;  %302 = vmatprep.subr.bf16.mxu1 %v365_v2  ;;  %v51_v4 = vld [vmem:[%s449_s0] sm:$0x3]  ;;  %v284_v5 = vld [vmem:[%s449_s0 + $0x2] sm:$0x3]  ;;  %vm134_vm3 = vcmask 1024   ;;  %s156_s18 = sld [smem:[#allocation3]]  ;;  %v49_v49 = vlaneseq }
  0x14   :  { %295 = vmatpush3.bf16.msra.mxu0 %v314_v1  ;;  %303 = vmatpush3.bf16.msra.mxu1 %v314_v1  ;;  %v52_v6 = vpack.c.bf16 %v51_v4, %v51_v4  ;;  %v171_v7 = vpack.c.bf16 %v284_v5, %v284_v5  ;;  %v278_v8 = vld [vmem:[%s451_s2] ss:$0 sm:$0xff]  ;;  %s367_s19 = smov [#allocation6]   ;;  %vm257_vm6 = vcmask 0  }
  0x15   :  { %296 = vmatprep.subr.bf16.mxu0 %v365_v2  ;;  %304 = vmatprep.subr.bf16.mxu1 %v365_v2  ;;  %v282_v19 = vld [vmem:[%s452_s3] ss:$0 sm:$0xff]  ;;  %v50_v51 = vshrl.u32 %v49_v49, 7  ;;  %s267_s20 = sshll.u32 %s367_s19, 4  ;;  %s268_s20 = int_to_ptr.vmem [resolvable:$true] %s267_s20 }
  0x16   :  { %298 = vmatprep.mubr.msk.bf16.mxu0 %vm366_vm0, %v365_v2  ;;  %306 = vmatprep.mubr.msk.bf16.mxu1 %vm366_vm0, %v365_v2  ;;  %v283_v26 = vld [vmem:[#allocation2] ss:$0 sm:$0xff]  ;;  %s340_s21 = scalar_lea.vmem %s268_s20, 16  ;;  %s344_s22 = scalar_lea.vmem %s268_s20, 32 }
  0x17   :  { %p341_p5 = scmp.ne.s32.totalorder %s268_s20, %s340_s21  ;;  %p345_p6 = scmp.lt.s32.totalorder %s268_s20, %s268_s20 }
  0x18   :  { %297 = vmatpush3.bf16.msra.mxu0 %v315_v3  ;;  %305 = vmatpush3.bf16.msra.mxu1 %v315_v3  ;;  %p346_p7 = scmp.lt.s32.totalorder %s344_s22, %s340_s21 }
  0x19   :  { %v157_v53 = vstv %s156_s18 }
  0x1a   :  { %vm158_vm4 = vcmp.eq.s32.totalorder %v50_v51, %v157_v53  ;;  %p347_p8 = por %p346_p7, %p345_p6 }
  0x1b   :  { %299 = vmatmul.mubr.msk.bf16.vlgmr.msra.gmra.mxu0 %vm71_vm1, %v52_v6  ;;  %307 = vmatmul.mubr.msk.bf16.vlgmr.msra.gmra.mxu1 %vm71_vm1, %v171_v7 }
  0x1c   :  { %p348_p9 = pnand %p347_p8, %p341_p5 }
  0xdb   :  { %v109_v9 = vpop.f32.mrf.mxu0  ;;  %v209_v10 = vpop.f32.mrf.mxu1 }
  0xdc   :  { %v110_v11 = vadd.f32 %v278_v8, %v109_v9  ;;  %v210_v12 = vadd.f32 %v278_v8, %v209_v10 }
  0xdd   :  { %v300_v13 = vpop.f32.mrf.mxu0  ;;  %v308_v14 = vpop.f32.mrf.mxu1 }
  0xde   :  { %316 = vtanh.f32 %v110_v11 }
  0xdf   :  { %318 = vtanh.f32 %v210_v12  ;;  %v112_v15 = vpop.f32.mrf.mxu0  ;;  %v212_v16 = vpop.f32.mrf.mxu1 }
  0xe1   :  { %v301_v17 = vpop.f32.mrf.mxu0  ;;  %v309_v18 = vpop.f32.mrf.mxu1 }
  0xeb   :  { %v317_v20 = vpop.eup %316 }
  0xec   :  { %v319_v21 = vpop.eup %318  ;;  %v122_v22 = vmul.f32 %v317_v20, %v282_v19 }
  0xed   :  { %v216_v23 = vmul.f32 %v319_v21, %v282_v19 }
  0xee   :  { %v124_v24 = vsel %vm123_vm2, %v122_v22, 0.0 }
  0xef   :  { %125 = vadd.xlane.f32.xlu0 %v124_v24  ;;  %v217_v25 = vsel %vm123_vm2, %v216_v23, 0.0 }
  0xf3   :  { %218 = vadd.xlane.f32.xlu0 %v217_v25 }
 0x178   :  { %v126_v27 = vpop.xlane.xlu0 %125 }
 0x179   :  { %v133_v28 = vadd.f32 %v283_v26, %v126_v27 }
 0x17b   :  { %135 = vst.msk [vmem:[%s455_s6] sm:$0x3] %vm134_vm3, %v133_v28  ;;  %v136_v29 = vsel %vm134_vm3, %v133_v28, -inf  ;;  %v159_v61 = vsel %vm158_vm4, %v133_v28, 0.0 }
 0x17c   :  { %v137_v30 = vrot.slane %v136_v29, 4  ;;  %v219_v31 = vpop.xlane.xlu0 %218  ;;  %v160_v3 = vsel %vm134_vm3, %v159_v61, 0.0 }
 0x17d   :  { %v220_v32 = vadd.f32 %v283_v26, %v219_v31  ;;  %v161_v7 = vrot.slane %v160_v3, 4 }
 0x17e   :  { %v138_v33 = vmax.f32 %v136_v29, %v137_v30 }
 0x17f   :  { %286 = vst.msk [vmem:[%s455_s6 + $0x2] sm:$0x3] %vm134_vm3, %v220_v32  ;;  %v223_v34 = vsel %vm134_vm3, %v220_v32, -inf  ;;  %s287_s6 = sld [smem:[#allocation3 + $0x1]]  ;;  %v162_v11 = vadd.f32 %v161_v7, %v160_v3 }
 0x180   :  { %v139_v35 = vrot.slane %v138_v33, 2  ;;  %v224_v36 = vrot.slane %v223_v34, 4 }
 0x181   :  { %v163_v13 = vrot.slane %v162_v11, 2 }
 0x182   :  { %v140_v37 = vmax.f32 %v138_v33, %v139_v35  ;;  %v225_v38 = vmax.f32 %v223_v34, %v224_v36 }
 0x183   :  { %v164_v15 = vadd.f32 %v163_v13, %v162_v11 }
 0x184   :  { %v141_v39 = vrot.slane %v140_v37, 1  ;;  %v226_v40 = vrot.slane %v225_v38, 2 }
 0x185   :  { %v244_v54 = vstv %s287_s6  ;;  %v165_v19 = vrot.slane %v164_v15, 1 }
 0x186   :  { %v142_v41 = vmax.f32 %v140_v37, %v141_v39  ;;  %v227_v42 = vmax.f32 %v225_v38, %v226_v40  ;;  %vm245_vm5 = vcmp.eq.s32.totalorder %v50_v51, %v244_v54 }
 0x187   :  { %v246_v62 = vsel %vm245_vm5, %v220_v32, 0.0  ;;  %v166_v24 = vadd.f32 %v165_v19, %v164_v15 }
 0x188   :  { %v143_v43 = vsub.f32 %v133_v28, %v142_v41  ;;  %v228_v44 = vrot.slane %v227_v42, 1  ;;  %v247_v4 = vsel %vm134_vm3, %v246_v62, 0.0 }
 0x189   :  { %v248_v8 = vrot.slane %v247_v4, 4 }
 0x18a   :  { %v144_v45 = vmul.f32 1.442695, %v143_v43  ;;  %v229_v46 = vmax.f32 %v227_v42, %v228_v44 }
 0x18b   :  { %v249_v12 = vadd.f32 %v248_v8, %v247_v4 }
 0x18c   :  { %320 = vpow2.f32 %v144_v45  ;;  %v230_v47 = vsub.f32 %v220_v32, %v229_v46 }
 0x18d   :  { %v250_v14 = vrot.slane %v249_v12, 2 }
 0x18e   :  { %v231_v48 = vmul.f32 1.442695, %v230_v47 }
 0x18f   :  { %v251_v16 = vadd.f32 %v250_v14, %v249_v12 }
 0x190   :  { %322 = vpow2.f32 %v231_v48 }
 0x191   :  { %v252_v20 = vrot.slane %v251_v16, 1 }
 0x193   :  { %v253_v26 = vadd.f32 %v252_v20, %v251_v16 }
 0x199   :  { %v321_v50 = vpop.eup %320 }
 0x19a   :  { %v146_v52 = vsel %vm134_vm3, %v321_v50, 0.0 }
 0x19b   :  { %v147_v55 = vrot.slane %v146_v52, 4 }
 0x19d   :  { %v323_v56 = vpop.eup %322  ;;  %v148_v57 = vadd.f32 %v147_v55, %v146_v52 }
 0x19e   :  { %v233_v58 = vsel %vm134_vm3, %v323_v56, 0.0 }
 0x19f   :  { %v149_v59 = vrot.slane %v148_v57, 2  ;;  %v234_v60 = vrot.slane %v233_v58, 4 }
 0x1a1   :  { %v150_v63 = vadd.f32 %v149_v59, %v148_v57  ;;  %v235_v0 = vadd.f32 %v234_v60, %v233_v58 }
 0x1a3   :  { %v151_v1 = vrot.slane %v150_v63, 1  ;;  %v236_v2 = vrot.slane %v235_v0, 2 }
 0x1a5   :  { %v152_v5 = vadd.f32 %v151_v1, %v150_v63  ;;  %v237_v6 = vadd.f32 %v236_v2, %v235_v0 }
 0x1a7   :  { %324 = vlog2.f32 %v152_v5  ;;  %v238_v9 = vrot.slane %v237_v6, 1 }
 0x1a9   :  { %v239_v10 = vadd.f32 %v238_v9, %v237_v6 }
 0x1ab   :  { %326 = vlog2.f32 %v239_v10 }
 0x1b4   :  { %v325_v17 = vpop.eup %324 }
 0x1b5   :  { %v154_v18 = vmul.f32 0.6931472, %v325_v17 }
 0x1b7   :  { %v155_v22 = vadd.f32 %v154_v18, %v142_v41 }
 0x1b8   :  { %v327_v21 = vpop.eup %326 }
 0x1b9   :  { %v241_v23 = vmul.f32 0.6931472, %v327_v21  ;;  %v167_v27 = vsub.f32 %v155_v22, %v166_v24 }
 0x1bb   :  { %v242_v25 = vadd.f32 %v241_v23, %v229_v46 }
 0x1bd   :  { %v254_v28 = vsub.f32 %v242_v25, %v253_v26 }
 0x1bf   :  { %v255_v29 = vadd.f32 %v254_v28, %v167_v27 }
 0x1c1   :  { %v256_v30 = vmul.f32 0.5, %v255_v29 }
 0x1c3   :  { %258 = vst.msk [vmem:[#allocation6] sm:$0x1] %vm257_vm6, %v256_v30 }
 0x1c4   :  { %351 = shalt.err (!%p348_p9)
}
 0x1c5   :  { %270 = dma.vmem_to_hbm [thread:$0]  %s268_s20, 16, %s456_s7, [#allocation4]  }
 0x1c6   :  { %362 = dma.done.wait [#allocation4], 16  }
 0x1c7   :  { %363 = vsyncadd [#allocation4], 4294967280 }
 0x1c8   :  { %276 = vsyncpa [#allocation4], 1 }
 0x1c9   :  { %277 = vsyncpa [#allocation5], 1 }

// kernel: multiple_choice_forward.2
= control target key start
LH: loop header
LB: loop body
LE: loop exit
PB: predicated region body
PF: predicated region fallthrough
CT: control target
= control target key end

     0   :  { %s2849_s21 = smov 0   ;;  %s3274_s0 = inlined_call_operand.vmem [shape: f32[32,32], index: 0, kind: input, shape index: {}]   ;;  %s3275_s1 = inlined_call_operand.vmem [shape: f32[4,1,8], index: 1, kind: input, shape index: {}]   ;;  %s3276_s2 = inlined_call_operand.vmem [shape: f32[1,32], index: 2, kind: input, shape index: {}]   ;;  %s3277_s3 = inlined_call_operand.vmem [shape: f32[1,32], index: 3, kind: input, shape index: {}]   ;;  %s3278_s4 = inlined_call_operand.vmem [shape: bf16[2,32,96], index: 4, kind: input, shape index: {}]   ;;  %s3279_s5 = inlined_call_operand.vmem [shape: f32[2,1,96], index: 5, kind: input, shape index: {}]   ;;  %s3280_s6 = inlined_call_operand.vmem [shape: bf16[2,32,32], index: 6, kind: input, shape index: {}]   ;;  %s3281_s7 = inlined_call_operand.vmem [shape: f32[2,1,32], index: 7, kind: input, shape index: {}]   ;;  %s3282_s8 = inlined_call_operand.vmem [shape: f32[2,1,32], index: 8, kind: input, shape index: {}]   ;;  %s3283_s9 = inlined_call_operand.vmem [shape: f32[2,1,32], index: 9, kind: input, shape index: {}]   ;;  %s3284_s10 = inlined_call_operand.vmem [shape: bf16[2,32,64], index: 10, kind: input, shape index: {}]   ;;  %s3285_s11 = inlined_call_operand.vmem [shape: f32[2,1,64], index: 11, kind: input, shape index: {}]   ;;  %s3286_s12 = inlined_call_operand.vmem [shape: bf16[2,64,32], index: 12, kind: input, shape index: {}]   ;;  %s3287_s13 = inlined_call_operand.vmem [shape: f32[2,1,32], index: 13, kind: input, shape index: {}]   ;;  %s3288_s14 = inlined_call_operand.vmem [shape: f32[2,1,32], index: 14, kind: input, shape index: {}]   ;;  %s3289_s15 = inlined_call_operand.vmem [shape: f32[2,1,32], index: 15, kind: input, shape index: {}]   ;;  %s3290_s16 = inlined_call_operand.vmem [shape: f32[32,32], index: 16, kind: output, shape index: {}]  }
   0x1   :  { %3296 = sst [smem:[#allocation6_spill]] %s3274_s0 }
   0x2   :  { %3297 = sst [smem:[#allocation7_spill]] %s3275_s1 }
   0x3   :  { %3298 = sst [smem:[#allocation8_spill]] %s3277_s3 }
   0x4   :  { %3299 = sst [smem:[#allocation9_spill]] %s3278_s4 }
   0x5   :  { %3300 = sst [smem:[#allocation10_spill]] %s3280_s6 }
   0x6   :  { %3301 = sst [smem:[#allocation11_spill]] %s3290_s16 }
   0x7 LB: > { %3302 = sst [smem:[#allocation4_spill]] %s2754_s21  ;;  %s2406_s22 = sadd.s32 4294967295, %s2754_s21   ;;  %s2754_s21 = sphi %s2849_s21, %s26_s21  }
   0x8   : > { %p2409_p0 = scmp.ge.s32.totalorder %s2754_s21, 1  ;;  %p551_p1 = scmp.lt.s32.totalorder %s2754_s21, 3 }
   0xa   : > { %p552_p2 = pnand %p2409_p0, %p551_p1 }
   0xc   : > { %555 = sbr.rel (%p552_p2) target bundleno = 2882 (0xb42), region = 84 }
  0x11   : > { %p635_p3 = scmp.lt.s32.totalorder %s2406_s22, 1  ;;  %s3303_s4 = sld [smem:[#allocation9_spill]] }
  0x12   : > { %s3304_s6 = sld [smem:[#allocation10_spill]]  ;;  %p2418_p4 = scmp.ne.s32.totalorder %s2406_s22, 0 }
  0x13   : > { %s2857_s23 = scalar_select %p635_p3, %s2406_s22, 1 }
  0x14   : > { %s3307_s0 = sld [smem:[#allocation8_spill]] (!%p2418_p4) }
  0x15   : > { %s2472_s24 = sshll.u32 %s2857_s23, 4  ;;  %s672_s25 = scalar_lea.vmem %s3287_s13, %s2857_s23 }
  0x16   : > { %s675_s28 = scalar_lea.vmem %s3288_s14, %s2857_s23  ;;  %s678_s3 = scalar_lea.vmem %s3289_s15, %s2857_s23 }
  0x17   : > { %s2867_s30 = scalar_lea.vmem %s3303_s4, %s2472_s24  ;;  %s2889_s4 = scalar_lea.vmem %s3284_s10, %s2472_s24 }
  0x18   : > { %s2872_s18 = scalar_lea.vmem %s3304_s6, %s2472_s24  ;;  %683 = sbr.rel (%p2418_p4) target bundleno = 350 (0x15e), region = 88 }
  0x19   : > { %3305 = sst [smem:[#allocation5_spill]] %s2872_s18  ;;  %s2475_s18 = sshll.u32 %s2857_s23, 5 }
  0x1a   : > { %s2899_s21 = scalar_lea.vmem %s3286_s12, %s2475_s18  ;;  %s3306_s6 = sld [smem:[#allocation6_spill]] (!%p2418_p4) }
  0x1d   : > { %vm690_vm0 = vcmask 261120   ;;  %v2419_v41 = vld [vmem:[%s3276_s2] ss:$0 sm:$0xff] }
  0x1e   : > { %v2420_v43 = vld [vmem:[%s3307_s0] ss:$0 sm:$0xff] }
  0x20   : > { %v684_v0 = vld [vmem:[%s3306_s6] sm:$0xff]  ;;  %v686_v1 = vld [vmem:[%s3306_s6 + $0x10] sm:$0xff]  ;;  %v685_v2 = vld [vmem:[%s3306_s6 + $0x8] sm:$0xff] }
  0x21   : > { %v691_v3 = vsel %vm690_vm0, %v684_v0, 0.0  ;;  %v697_v4 = vsel %vm690_vm0, %v686_v1, 0.0  ;;  %v687_v5 = vld [vmem:[%s3306_s6 + $0x18] sm:$0xff]  ;;  %v694_v6 = vsel %vm690_vm0, %v685_v2, 0.0 }
  0x22   : > { %692 = vadd.xlane.f32.xlu0 %v691_v3  ;;  %698 = vadd.xlane.f32.xlu1 %v697_v4  ;;  %v700_v7 = vsel %vm690_vm0, %v687_v5, 0.0 }
  0x26   : > { %695 = vadd.xlane.f32.xlu0 %v694_v6  ;;  %701 = vadd.xlane.f32.xlu1 %v700_v7 }
  0xab   : > { %v693_v8 = vpop.xlane.xlu0 %692  ;;  %v699_v9 = vpop.xlane.xlu1 %698 }
  0xac   : > { %v704_v10 = vmul.f32 0.03125, %v693_v8  ;;  %v706_v11 = vmul.f32 0.03125, %v699_v9 }
  0xae   : > { %v708_v12 = vsub.f32 %v684_v0, %v704_v10  ;;  %v710_v13 = vsub.f32 %v686_v1, %v706_v11 }
  0xaf   : > { %v696_v14 = vpop.xlane.xlu0 %695  ;;  %v702_v15 = vpop.xlane.xlu1 %701 }
  0xb0   : > { %v705_v16 = vmul.f32 0.03125, %v696_v14  ;;  %v707_v17 = vmul.f32 0.03125, %v702_v15  ;;  %v712_v18 = vmul.f32 %v708_v12, %v708_v12  ;;  %v714_v19 = vmul.f32 %v710_v13, %v710_v13 }
  0xb2   : > { %v709_v20 = vsub.f32 %v685_v2, %v705_v16  ;;  %v711_v21 = vsub.f32 %v687_v5, %v707_v17  ;;  %v716_v22 = vsel %vm690_vm0, %v712_v18, 0.0  ;;  %v722_v23 = vsel %vm690_vm0, %v714_v19, 0.0 }
  0xb3   : > { %717 = vadd.xlane.f32.xlu0 %v716_v22 }
  0xb4   : > { %v713_v24 = vmul.f32 %v709_v20, %v709_v20  ;;  %v715_v25 = vmul.f32 %v711_v21, %v711_v21 }
  0xb6   : > { %v719_v26 = vsel %vm690_vm0, %v713_v24, 0.0  ;;  %v725_v27 = vsel %vm690_vm0, %v715_v25, 0.0 }
  0xb7   : > { %723 = vadd.xlane.f32.xlu0 %v722_v23  ;;  %720 = vadd.xlane.f32.xlu1 %v719_v26 }
  0xbb   : > { %726 = vadd.xlane.f32.xlu1 %v725_v27 }
 0x13c   : > { %v718_v28 = vpop.xlane.xlu0 %717 }
 0x13d   : > { %v728_v29 = vmul.f32 0.03125, %v718_v28 }
 0x13f   : > { %v732_v30 = vadd.f32 1e-12, %v728_v29 }
 0x140   : > { %v721_v31 = vpop.xlane.xlu1 %720  ;;  %v724_v32 = vpop.xlane.xlu0 %723 }
 0x141   : > { %2674 = vrsqrt.f32 %v732_v30  ;;  %v729_v33 = vmul.f32 0.03125, %v721_v31  ;;  %v730_v34 = vmul.f32 0.03125, %v724_v32 }
 0x143   : > { %v733_v35 = vadd.f32 1e-12, %v729_v33  ;;  %v734_v36 = vadd.f32 1e-12, %v730_v34 }
 0x144   : > { %v727_v37 = vpop.xlane.xlu1 %726 }
 0x145   : > { %2676 = vrsqrt.f32 %v733_v35  ;;  %v731_v38 = vmul.f32 0.03125, %v727_v37 }
 0x146   : > { %2678 = vrsqrt.f32 %v734_v36 }
 0x147   : > { %v735_v39 = vadd.f32 1e-12, %v731_v38 }
 0x149   : > { %2680 = vrsqrt.f32 %v735_v39 }
 0x14e   : > { %v2675_v40 = vpop.eup %2674 }
 0x14f   : > { %v740_v42 = vmul.f32 %v2675_v40, %v708_v12 }
 0x151   : > { %v750_v44 = vmul.f32 %v2419_v41, %v740_v42 }
 0x152   : > { %v2677_v45 = vpop.eup %2676 }
 0x153   : > { %v2679_v46 = vpop.eup %2678  ;;  %v760_v47 = vadd.f32 %v2420_v43, %v750_v44  ;;  %v741_v48 = vmul.f32 %v2677_v45, %v709_v20 }
 0x154   : > { %v742_v49 = vmul.f32 %v2679_v46, %v710_v13 }
 0x155   : > { %764 = vst.msk [vmem:[#allocation2] sm:$0xff] %vm690_vm0, %v760_v47  ;;  %v751_v50 = vmul.f32 %v2419_v41, %v741_v48 }
 0x156   : > { %v2681_v51 = vpop.eup %2680  ;;  %v752_v52 = vmul.f32 %v2419_v41, %v742_v49 }
 0x157   : > { %v761_v53 = vadd.f32 %v2420_v43, %v751_v50  ;;  %v743_v54 = vmul.f32 %v2681_v51, %v711_v21 }
 0x158   : > { %v762_v55 = vadd.f32 %v2420_v43, %v752_v52 }
 0x159   : > { %765 = vst.msk [vmem:[#allocation2 + $0x8] sm:$0xff] %vm690_vm0, %v761_v53  ;;  %v753_v56 = vmul.f32 %v2419_v41, %v743_v54 }
 0x15a   : > { %766 = vst.msk [vmem:[#allocation2 + $0x10] sm:$0xff] %vm690_vm0, %v762_v55 }
 0x15b   : > { %v763_v57 = vadd.f32 %v2420_v43, %v753_v56 }
 0x15d   : > { %767 = vst.msk [vmem:[#allocation2 + $0x18] sm:$0xff] %vm690_vm0, %v763_v57 }
 0x15e PF: > { %v2682_v58 = vld [vmem:[%s2867_s30 + $0x8] sm:$0xff]   ;;  %v2683_v59 = vld [vmem:[%s2867_s30] sm:$0xff]   ;;  %vm797_vm1 = vcmask 261120   ;;  %v2756_v2 = vmov 0.0   ;;  %vm2757_vm2 = vmmov 0   ;;  %s3308_s18 = scalar_lea.vmem %s3279_s5, %s2857_s23  ;;  %s2758_s19 = smov 112  }
 0x15f   : > { %2526 = vmatprep.subr.bf16.mxu0 %v2682_v58  ;;  %v2945_v60 = vld [vmem:[#allocation2] sm:$0xff]  ;;  %2534 = vmatprep.subr.bf16.mxu1 %v2756_v2  ;;  %s2759_s20 = smov 96   ;;  %s2760_s1 = smov 80   ;;  %vm858_vm3 = vcmask 130048   ;;  %vm913_vm4 = vcmask 64512   ;;  %vm931_vm5 = vcmask 1043456  }
 0x160   : > { %v2947_v61 = vld [vmem:[#allocation2 + $0x8] sm:$0xff]  ;;  %2527 = vmatpush3.bf16.msra.mxu0 %v2682_v58  ;;  %2536 = vmatprep.mubr.msk.bf16.mxu1 %vm2757_vm2, %v2756_v2  ;;  %v2421_v4 = vld [vmem:[%s3308_s18] ss:$0 sm:$0xff]  ;;  %s3309_s16 = sld [smem:[#allocation7_spill]]  ;;  %s2761_s18 = smov 48   ;;  %vm1092_vm6 = vcmask 261248  }
 0x161   : > { %v2949_v62 = vld [vmem:[#allocation2 + $0x10] sm:$0xff]  ;;  %v776_v63 = vpack.c.bf16 %v2947_v61, %v2945_v60  ;;  %2528 = vmatprep.subr.bf16.mxu0 %v2683_v59  ;;  %s3311_s26 = scalar_lea.vmem %s3281_s7, %s2857_s23  ;;  %s3312_s29 = scalar_lea.vmem %s3282_s8, %s2857_s23  ;;  %vm2128_vm7 = vcmask 523264  }
 0x162   : > { %s3313_s17 = scalar_lea.vmem %s3283_s9, %s2857_s23 }
 0x163   : > { %2530 = vmatprep.mubr.msk.bf16.mxu0 %vm797_vm1, %v776_v63 }
 0x164   : > { %v2953_v0 = vld [vmem:[#allocation2 + $0x18] sm:$0xff]  ;;  %2529 = vmatpush3.bf16.msra.mxu0 %v2683_v59 }
 0x165   : > { %v777_v1 = vpack.c.bf16 %v2953_v0, %v2949_v62  ;;  %2540 = vmatprep.subr.bf16.mxu0 %v2756_v2 }
 0x166   : > { %v2427_v37 = vld [vmem:[%s3309_s16] ss:$0 sm:$0xff]  ;;  %v2433_v52 = vld [vmem:[%s3309_s16 + $0x1] ss:$0 sm:$0xff] }
 0x167   : > { %2531 = vmatmul.mubr.msk.bf16.vlgmr.msra.gmra.mxu0 %vm797_vm1, %v777_v1 }
 0x168   : > { %2542 = vmatprep.mubr.msk.bf16.mxu0 %vm2757_vm2, %v2756_v2 }
 0x227   : > { %v2532_v3 = vpop.f32.mrf.mxu0 }
 0x228   : > { %v847_v12 = vadd.f32 %v2532_v3, %v2421_v4 }
 0x229   : > { %v838_v5 = vpop.f32.mrf.mxu0 }
 0x22a   : > { %v839_v6 = vadd.f32 %v2421_v4, %v838_v5  ;;  %v2980_v13 = vpack.c.bf16 %v847_v12, %v847_v12 }
 0x22b   : > { %v2533_v7 = vpop.f32.mrf.mxu0 }
 0x22c   : > { %v2970_v8 = vpack.c.bf16 %v839_v6, %v839_v6  ;;  %v850_v14 = vadd.f32 %v2533_v7, %v2421_v4 }
 0x22d   : > { %v841_v9 = vpop.f32.mrf.mxu0 }
 0x22e   : > { %v842_v10 = vadd.f32 %v2421_v4, %v841_v9  ;;  %976 = vrot.lane.b32.xlu1 %v2970_v8, %s2758_s19  ;;  %856 = vrot.lane.b32.xlu0 %v2970_v8, %s2759_s20  ;;  %v2984_v15 = vpack.c.bf16 %v850_v14, %v850_v14  ;;  %v2439_v9 = vld [vmem:[%s3309_s16 + $0x2] ss:$0 sm:$0xff] }
 0x230   : > { %v2974_v11 = vpack.c.bf16 %v842_v10, %v842_v10 }
 0x232   : > { %1098 = vrot.lane.b32.xlu1 %v2974_v11, %s2759_s20  ;;  %978 = vrot.lane.b32.xlu0 %v2970_v8, %s2760_s1 }
 0x236   : > { %1215 = vrot.lane.b32.xlu1 %v2974_v11, %s2758_s19  ;;  %1217 = vrot.lane.b32.xlu0 %v2974_v11, %s2760_s1 }
 0x23a   : > { %1455 = vrot.lane.b32.xlu1 %v2980_v13, %s2760_s1  ;;  %1336 = vrot.lane.b32.xlu0 %v2980_v13, %s2759_s20 }
 0x23e   : > { %1574 = vrot.lane.b32.xlu1 %v2984_v15, %s2759_s20  ;;  %1453 = vrot.lane.b32.xlu0 %v2980_v13, %s2758_s19  ;;  %s2763_s20 = smov 16  }
 0x242   : > { %1691 = vrot.lane.b32.xlu1 %v2984_v15, %s2758_s19  ;;  %1693 = vrot.lane.b32.xlu0 %v2984_v15, %s2760_s1  ;;  %s2762_s19 = smov 64   ;;  %s3310_s1 = sld [smem:[#allocation5_spill]] }
 0x2a0   : > { %v857_v16 = vpop.permute.xlu0 %856  ;;  %v977_v19 = vpop.permute.xlu1 %976 }
 0x2a1   : > { %v863_v17 = vsel %vm858_vm3, %v857_v16, 0 }
 0x2a2   : > { %2535 = vmatpush3.bf16.xpose.msra.mxu1 %v863_v17 }
 0x2a3   : > { %2546 = vmatprep.subr.bf16.mxu1 %v2756_v2 }
 0x2a4   : > { %v979_v18 = vpop.permute.xlu0 %978  ;;  %v1099_v21 = vpop.permute.xlu1 %1098 }
 0x2a5   : > { %v984_v20 = vsel %vm858_vm3, %v979_v18, 0  ;;  %v1104_v22 = vsel %vm858_vm3, %v1099_v21, 0 }
 0x2a8   : > { %v1218_v23 = vpop.permute.xlu0 %1217  ;;  %v1216_v26 = vpop.permute.xlu1 %1215 }
 0x2a9   : > { %2537 = vmatmul.mubr.msk.bf16.vlgmr.msra.gmra.mxu1 %vm858_vm3, %v2970_v8  ;;  %v1223_v24 = vsel %vm858_vm3, %v1218_v23, 0 }
 0x2aa   : > { %2547 = vmatpush3.bf16.xpose.msra.mxu1 %v984_v20  ;;  %2548 = vmatprep.mubr.msk.bf16.mxu1 %vm2757_vm2, %v2756_v2 }
 0x2ab   : > { %2558 = vmatprep.subr.bf16.mxu1 %v2756_v2 }
 0x2ac   : > { %v1337_v25 = vpop.permute.xlu0 %1336  ;;  %v1456_v28 = vpop.permute.xlu1 %1455 }
 0x2ad   : > { %v1342_v27 = vsel %vm858_vm3, %v1337_v25, 0  ;;  %v1461_v29 = vsel %vm858_vm3, %v1456_v28, 0 }
 0x2b0   : > { %v1575_v30 = vpop.permute.xlu1 %1574  ;;  %v1454_v31 = vpop.permute.xlu0 %1453 }
 0x2b1   : > { %2549 = vmatmul.mubr.msk.bf16.vlgmr.msra.gmra.mxu1 %vm858_vm3, %v977_v19  ;;  %v1580_v32 = vsel %vm858_vm3, %v1575_v30, 0 }
 0x2b2   : > { %2559 = vmatpush3.bf16.xpose.msra.mxu1 %v1104_v22  ;;  %2560 = vmatprep.mubr.msk.bf16.mxu1 %vm2757_vm2, %v2756_v2 }
 0x2b3   : > { %2570 = vmatprep.subr.bf16.mxu1 %v2756_v2 }
 0x2b4   : > { %v1694_v33 = vpop.permute.xlu0 %1693  ;;  %v1692_v35 = vpop.permute.xlu1 %1691 }
 0x2b5   : > { %v1699_v34 = vsel %vm858_vm3, %v1694_v33, 0 }
 0x2b9   : > { %2561 = vmatmul.mubr.msk.bf16.vlgmr.msra.gmra.mxu1 %vm858_vm3, %v2974_v11 }
 0x2ba   : > { %2571 = vmatpush3.bf16.xpose.msra.mxu1 %v1223_v24  ;;  %2572 = vmatprep.mubr.msk.bf16.mxu1 %vm2757_vm2, %v2756_v2 }
 0x2bb   : > { %2582 = vmatprep.subr.bf16.mxu1 %v2756_v2 }
 0x2c1   : > { %2573 = vmatmul.mubr.msk.bf16.vlgmr.msra.gmra.mxu1 %vm858_vm3, %v1216_v26 }
 0x2c2   : > { %2583 = vmatpush3.bf16.xpose.msra.mxu1 %v1342_v27  ;;  %2584 = vmatprep.mubr.msk.bf16.mxu1 %vm2757_vm2, %v2756_v2  ;;  %v2445_v27 = vld [vmem:[%s3309_s16 + $0x3] ss:$0 sm:$0xff] }
 0x2c3   : > { %2594 = vmatprep.subr.bf16.mxu1 %v2756_v2 }
 0x2c9   : > { %2585 = vmatmul.mubr.msk.bf16.vlgmr.msra.gmra.mxu1 %vm858_vm3, %v2980_v13 }
 0x2ca   : > { %2595 = vmatpush3.bf16.xpose.msra.mxu1 %v1461_v29  ;;  %2596 = vmatprep.mubr.msk.bf16.mxu1 %vm2757_vm2, %v2756_v2 }
 0x2cb   : > { %2606 = vmatprep.subr.bf16.mxu1 %v2756_v2 }
 0x2d1   : > { %2597 = vmatmul.mubr.msk.bf16.vlgmr.msra.gmra.mxu1 %vm858_vm3, %v1454_v31 }
 0x2d2   : > { %2607 = vmatpush3.bf16.xpose.msra.mxu1 %v1580_v32  ;;  %2608 = vmatprep.mubr.msk.bf16.mxu1 %vm2757_vm2, %v2756_v2 }
 0x2d3   : > { %2618 = vmatprep.subr.bf16.mxu1 %v2756_v2 }
 0x2d9   : > { %2609 = vmatmul.mubr.msk.bf16.vlgmr.msra.gmra.mxu1 %vm858_vm3, %v2984_v15 }
 0x2da   : > { %2619 = vmatpush3.bf16.xpose.msra.mxu1 %v1699_v34  ;;  %2620 = vmatprep.mubr.msk.bf16.mxu1 %vm2757_vm2, %v2756_v2 }
 0x2e1   : > { %2621 = vmatmul.mubr.msk.bf16.vlgmr.msra.gmra.mxu1 %vm858_vm3, %v1692_v35 }
 0x369   : > { %v899_v36 = vpop.f32.mrf.mxu1 }
 0x36a   : > { %v905_v38 = vmul.f32 0.25, %v899_v36 }
 0x36b   : > { %v2538_v39 = vpop.f32.mrf.mxu1 }
 0x36c   : > { %v3034_v40 = vadd.f32 %v2427_v37, %v905_v38 }
 0x36d   : > { %v902_v41 = vpop.f32.mrf.mxu1 }
 0x36e   : > { %v914_v42 = vsel %vm913_vm4, %v3034_v40, -inf }
 0x36f   : > { %915 = vmax.xlane.f32.xlu0 %v914_v42  ;;  %v2539_v43 = vpop.f32.mrf.mxu1 }
 0x371   : > { %v1020_v44 = vpop.f32.mrf.mxu1 }
 0x372   : > { %v1026_v45 = vmul.f32 0.25, %v1020_v44 }
 0x373   : > { %v2550_v46 = vpop.f32.mrf.mxu1 }
 0x374   : > { %v3038_v47 = vadd.f32 %v2427_v37, %v1026_v45 }
 0x375   : > { %v1023_v48 = vpop.f32.mrf.mxu1 }
 0x376   : > { %v1028_v49 = vsel %vm913_vm4, %v3038_v47, -inf }
 0x377   : > { %1029 = vmax.xlane.f32.xlu1 %v1028_v49  ;;  %v2551_v50 = vpop.f32.mrf.mxu1 }
 0x379   : > { %v1140_v51 = vpop.f32.mrf.mxu1 }
 0x37a   : > { %v1146_v53 = vmul.f32 0.25, %v1140_v51 }
 0x37b   : > { %v2562_v54 = vpop.f32.mrf.mxu1 }
 0x37c   : > { %v1153_v55 = vadd.f32 %v2433_v52, %v1146_v53 }
 0x37d   : > { %v1143_v56 = vpop.f32.mrf.mxu1 }
 0x37e   : > { %v1154_v57 = vsel %vm913_vm4, %v1153_v55, -inf }
 0x37f   : > { %1155 = vmax.xlane.f32.xlu0 %v1154_v57  ;;  %v2563_v58 = vpop.f32.mrf.mxu1 }
 0x381   : > { %v1259_v59 = vpop.f32.mrf.mxu1 }
 0x382   : > { %v1265_v63 = vmul.f32 0.25, %v1259_v59 }
 0x383   : > { %v2574_v1 = vpop.f32.mrf.mxu1 }
 0x384   : > { %v3046_v3 = vadd.f32 %v2433_v52, %v1265_v63 }
 0x385   : > { %v1262_v4 = vpop.f32.mrf.mxu1 }
 0x386   : > { %v1267_v5 = vsel %vm913_vm4, %v3046_v3, -inf }
 0x387   : > { %1268 = vmax.xlane.f32.xlu0 %v1267_v5  ;;  %v2575_v6 = vpop.f32.mrf.mxu1 }
 0x389   : > { %v1378_v7 = vpop.f32.mrf.mxu1 }
 0x38a   : > { %v1384_v10 = vmul.f32 0.25, %v1378_v7 }
 0x38b   : > { %v2586_v12 = vpop.f32.mrf.mxu1 }
 0x38c   : > { %v3053_v14 = vadd.f32 %v2439_v9, %v1384_v10 }
 0x38d   : > { %v1381_v16 = vpop.f32.mrf.mxu1 }
 0x38e   : > { %v1392_v17 = vsel %vm913_vm4, %v3053_v14, -inf }
 0x38f   : > { %1393 = vmax.xlane.f32.xlu1 %v1392_v17  ;;  %v2587_v18 = vpop.f32.mrf.mxu1 }
 0x391   : > { %v1497_v19 = vpop.f32.mrf.mxu1 }
 0x392   : > { %v1503_v20 = vmul.f32 0.25, %v1497_v19 }
 0x393   : > { %v2598_v21 = vpop.f32.mrf.mxu1 }
 0x394   : > { %v3057_v22 = vadd.f32 %v2439_v9, %v1503_v20 }
 0x395   : > { %v1500_v23 = vpop.f32.mrf.mxu1 }
 0x396   : > { %v1505_v24 = vsel %vm913_vm4, %v3057_v22, -inf }
 0x397   : > { %1506 = vmax.xlane.f32.xlu0 %v1505_v24  ;;  %v2599_v25 = vpop.f32.mrf.mxu1 }
 0x399   : > { %v1616_v26 = vpop.f32.mrf.mxu1 }
 0x39a   : > { %v1622_v28 = vmul.f32 0.25, %v1616_v26 }
 0x39b   : > { %v2610_v29 = vpop.f32.mrf.mxu1 }
 0x39c   : > { %v1629_v30 = vadd.f32 %v2445_v27, %v1622_v28 }
 0x39d   : > { %v1619_v31 = vpop.f32.mrf.mxu1 }
 0x39e   : > { %v1630_v32 = vsel %vm913_vm4, %v1629_v30, -inf }
 0x39f   : > { %1631 = vmax.xlane.f32.xlu1 %v1630_v32  ;;  %v2611_v33 = vpop.f32.mrf.mxu1 }
 0x3a1   : > { %v1735_v34 = vpop.f32.mrf.mxu1 }
 0x3a2   : > { %v1741_v38 = vmul.f32 0.25, %v1735_v34 }
 0x3a3   : > { %v2622_v35 = vpop.f32.mrf.mxu1 }
 0x3a4   : > { %v1742_v39 = vadd.f32 %v2445_v27, %v1741_v38 }
 0x3a5   : > { %v1738_v36 = vpop.f32.mrf.mxu1 }
 0x3a6   : > { %v1743_v41 = vsel %vm913_vm4, %v1742_v39, -inf }
 0x3a7   : > { %v2623_v37 = vpop.f32.mrf.mxu1 }
 0x3ad   : > { %1040 = vrot.lane.b32.xlu0 %v2970_v8, %s2761_s18 }
 0x3b0   : > { %926 = vrot.lane.b32.xlu1 %v2970_v8, %s2762_s19 }
 0x3cc   : > { %1744 = vmax.xlane.f32.xlu0 %v1743_v41 }
 0x3f8   : > { %v916_v42 = vpop.xlane.xlu0 %915 }
 0x3f9   : > { %v917_v43 = vsub.f32 %v3034_v40, %v916_v42 }
 0x3fb   : > { %v918_v44 = vmul.f32 1.442695, %v917_v43 }
 0x3fd   : > { %2692 = vpow2.f32 %v918_v44 }
 0x400   : > { %v1030_v45 = vpop.xlane.xlu1 %1029 }
 0x401   : > { %v1031_v46 = vsub.f32 %v3038_v47, %v1030_v45 }
 0x403   : > { %v1032_v48 = vmul.f32 1.442695, %v1031_v46 }
 0x405   : > { %2694 = vpow2.f32 %v1032_v48 }
 0x408   : > { %v1156_v49 = vpop.xlane.xlu0 %1155 }
 0x409   : > { %v1157_v50 = vsub.f32 %v1153_v55, %v1156_v49 }
 0x40a   : > { %v3072_v51 = vpop.eup %2692 }
 0x40b   : > { %v1158_v8 = vmul.f32 1.442695, %v1157_v50  ;;  %v920_v52 = vsel %vm913_vm4, %v3072_v51, 0.0 }
 0x40c   : > { %921 = vadd.xlane.f32.xlu1 %v920_v52 }
 0x40d   : > { %2696 = vpow2.f32 %v1158_v8 }
 0x410   : > { %v1269_v58 = vpop.xlane.xlu0 %1268 }
 0x411   : > { %v1270_v63 = vsub.f32 %v3046_v3, %v1269_v58 }
 0x412   : > { %v3076_v53 = vpop.eup %2694 }
 0x413   : > { %v1034_v40 = vsel %vm913_vm4, %v3076_v53, 0.0  ;;  %v1271_v1 = vmul.f32 1.442695, %v1270_v63 }
 0x414   : > { %1035 = vadd.xlane.f32.xlu0 %v1034_v40 }
 0x415   : > { %2698 = vpow2.f32 %v1271_v1 }
 0x418   : > { %v1394_v55 = vpop.xlane.xlu1 %1393 }
 0x419   : > { %v1395_v4 = vsub.f32 %v3053_v14, %v1394_v55 }
 0x41a   : > { %v3080_v54 = vpop.eup %2696 }
 0x41b   : > { %v1160_v47 = vsel %vm913_vm4, %v3080_v54, 0.0  ;;  %v1396_v7 = vmul.f32 1.442695, %v1395_v4 }
 0x41c   : > { %1161 = vadd.xlane.f32.xlu1 %v1160_v47 }
 0x41d   : > { %2700 = vpow2.f32 %v1396_v7 }
 0x420   : > { %v1507_v5 = vpop.xlane.xlu0 %1506 }
 0x421   : > { %v1508_v6 = vsub.f32 %v3057_v22, %v1507_v5 }
 0x423   : > { %v1509_v10 = vmul.f32 1.442695, %v1508_v6 }
 0x424   : > { %v1041_v21 = vpop.permute.xlu0 %1040 }
 0x425   : > { %2702 = vpow2.f32 %v1509_v10  ;;  %v1046_v33 = vsel %vm931_vm5, %v1041_v21, 0 }
 0x428   : > { %v1632_v56 = vpop.xlane.xlu1 %1631 }
 0x429   : > { %v1633_v9 = vsub.f32 %v1629_v30, %v1632_v56 }
 0x42a   : > { %1166 = vrot.lane.b32.xlu0 %v2974_v11, %s2762_s19 }
 0x42b   : > { %v1634_v12 = vmul.f32 1.442695, %v1633_v9 }
 0x42c   : > { %v927_v57 = vpop.permute.xlu1 %926 }
 0x42d   : > { %v933_v59 = vsel %vm931_vm5, %v927_v57, 0  ;;  %1279 = vrot.lane.b32.xlu1 %v2974_v11, %s2761_s18  ;;  %2704 = vpow2.f32 %v1634_v12  ;;  %v2699_v11 = vpop.eup %2698 }
 0x42e   : > { %2541 = vmatpush3.bf16.msra.mxu0 %v933_v59  ;;  %v1273_v16 = vsel %vm913_vm4, %v2699_v11, 0.0  ;;  %v3094_v17 = vpop.eup %2700 }
 0x42f   : > { %2552 = vmatprep.subr.bf16.mxu0 %v2756_v2  ;;  %v1398_v14 = vsel %vm913_vm4, %v3094_v17, 0.0 }
 0x432   : > { %v3096_v3 = vpop.eup %2702 }
 0x433   : > { %v1511_v20 = vsel %vm913_vm4, %v3096_v3, 0.0 }
 0x43a   : > { %v3100_v18 = vpop.eup %2704 }
 0x43b   : > { %v1636_v19 = vsel %vm913_vm4, %v3100_v18, 0.0 }
 0x449   : > { %1274 = vadd.xlane.f32.xlu0 %v1273_v16 }
 0x44d   : > { %1399 = vadd.xlane.f32.xlu0 %v1398_v14 }
 0x451   : > { %1637 = vadd.xlane.f32.xlu0 %v1636_v19  ;;  %1512 = vadd.xlane.f32.xlu1 %v1511_v20 }
 0x455   : > { %v1745_v22 = vpop.xlane.xlu0 %1744 }
 0x456   : > { %v1746_v23 = vsub.f32 %v1742_v39, %v1745_v22 }
 0x458   : > { %v1747_v24 = vmul.f32 1.442695, %v1746_v23 }
 0x45a   : > { %2706 = vpow2.f32 %v1747_v24 }
 0x462   : > { %1517 = vrot.lane.b32.xlu1 %v2980_v13, %s2761_s18 }
 0x466   : > { %1642 = vrot.lane.b32.xlu1 %v2984_v15, %s2762_s19 }
 0x467   : > { %v3110_v25 = vpop.eup %2706 }
 0x468   : > { %v1749_v26 = vsel %vm913_vm4, %v3110_v25, 0.0 }
 0x469   : > { %1750 = vadd.xlane.f32.xlu0 %v1749_v26 }
 0x46a   : > { %1755 = vrot.lane.b32.xlu1 %v2984_v15, %s2761_s18 }
 0x47f   : > { %1404 = vrot.lane.b32.xlu0 %v2980_v13, %s2762_s19 }
 0x495   : > { %v922_v27 = vpop.xlane.xlu1 %921 }
 0x496   : > { %2708 = vrcp.f32 %v922_v27 }
 0x49d   : > { %v1036_v28 = vpop.xlane.xlu0 %1035 }
 0x49e   : > { %2710 = vrcp.f32 %v1036_v28 }
 0x4a1   : > { %v1167_v34 = vpop.permute.xlu0 %1166 }
 0x4a2   : > { %v1172_v36 = vsel %vm931_vm5, %v1167_v34, 0  ;;  %v2685_v34 = vld [vmem:[%s3310_s1] sm:$0xff]  }
 0x4a3   : > { %v2709_v29 = vpop.eup %2708 }
 0x4a4   : > { %v924_v30 = vmul.f32 %v2709_v29, %v3072_v51 }
 0x4a5   : > { %v1162_v31 = vpop.xlane.xlu1 %1161 }
 0x4a6   : > { %2712 = vrcp.f32 %v1162_v31  ;;  %v925_v32 = vpack.c.bf16 %v924_v30, %v924_v30 }
 0x4a8   : > { %2543 = vmatmul.mubr.msk.bf16.vlgmr.msra.gmra.mxu0 %vm913_vm4, %v925_v32 }
 0x4a9   : > { %2553 = vmatpush3.bf16.msra.mxu0 %v1046_v33  ;;  %2554 = vmatprep.mubr.msk.bf16.mxu0 %vm2757_vm2, %v2756_v2  ;;  %v1280_v39 = vpop.permute.xlu1 %1279 }
 0x4aa   : > { %2564 = vmatprep.subr.bf16.mxu0 %v2756_v2  ;;  %v1285_v42 = vsel %vm931_vm5, %v1280_v39, 0 }
 0x4ab   : > { %v2711_v13 = vpop.eup %2710 }
 0x4ac   : > { %v1038_v15 = vmul.f32 %v2711_v13, %v3076_v53 }
 0x4ae   : > { %v1039_v35 = vpack.c.bf16 %v1038_v15, %v1038_v15  ;;  %v2684_v15 = vld [vmem:[%s3310_s1 + $0x8] sm:$0xff]  }
 0x4af   : > { %2630 = vmatprep.subr.bf16.mxu1 %v2684_v15 }
 0x4b0   : > { %2555 = vmatmul.mubr.msk.bf16.vlgmr.msra.gmra.mxu0 %vm913_vm4, %v1039_v35  ;;  %2631 = vmatpush3.bf16.msra.mxu1 %v2684_v15 }
 0x4b1   : > { %2565 = vmatpush3.bf16.msra.mxu0 %v1172_v36  ;;  %2566 = vmatprep.mubr.msk.bf16.mxu0 %vm2757_vm2, %v2756_v2 }
 0x4b2   : > { %2576 = vmatprep.subr.bf16.mxu0 %v2756_v2  ;;  %2632 = vmatprep.subr.bf16.mxu1 %v2685_v34 }
 0x4b3   : > { %v2713_v37 = vpop.eup %2712 }
 0x4b4   : > { %v1164_v38 = vmul.f32 %v2713_v37, %v3080_v54  ;;  %2633 = vmatpush3.bf16.msra.mxu1 %v2685_v34 }
 0x4b6   : > { %v1165_v41 = vpack.c.bf16 %v1164_v38, %v1164_v38 }
 0x4b8   : > { %2567 = vmatmul.mubr.msk.bf16.vlgmr.msra.gmra.mxu0 %vm913_vm4, %v1165_v41 }
 0x4b9   : > { %2577 = vmatpush3.bf16.msra.mxu0 %v1285_v42  ;;  %2578 = vmatprep.mubr.msk.bf16.mxu0 %vm2757_vm2, %v2756_v2 }
 0x4ba   : > { %2588 = vmatprep.subr.bf16.mxu0 %v2756_v2 }
 0x4d2   : > { %v1275_v43 = vpop.xlane.xlu0 %1274 }
 0x4d3   : > { %2714 = vrcp.f32 %v1275_v43 }
 0x4d6   : > { %v1400_v46 = vpop.xlane.xlu0 %1399 }
 0x4d7   : > { %2716 = vrcp.f32 %v1400_v46 }
 0x4da   : > { %v1513_v49 = vpop.xlane.xlu1 %1512  ;;  %v1638_v50 = vpop.xlane.xlu0 %1637 }
 0x4db   : > { %2718 = vrcp.f32 %v1513_v49 }
 0x4dc   : > { %2720 = vrcp.f32 %v1638_v50 }
 0x4de   : > { %v1518_v54 = vpop.permute.xlu1 %1517 }
 0x4df   : > { %v1523_v56 = vsel %vm931_vm5, %v1518_v54, 0 }
 0x4e0   : > { %v2715_v44 = vpop.eup %2714 }
 0x4e1   : > { %v1277_v45 = vmul.f32 %v2715_v44, %v2699_v11 }
 0x4e2   : > { %v1643_v58 = vpop.permute.xlu1 %1642 }
 0x4e3   : > { %v1278_v48 = vpack.c.bf16 %v1277_v45, %v1277_v45  ;;  %v1648_v1 = vsel %vm931_vm5, %v1643_v58, 0 }
 0x4e4   : > { %v2717_v51 = vpop.eup %2716 }
 0x4e5   : > { %2579 = vmatmul.mubr.msk.bf16.vlgmr.msra.gmra.mxu0 %vm913_vm4, %v1278_v48  ;;  %v1402_v52 = vmul.f32 %v2717_v51, %v3094_v17 }
 0x4e6   : > { %2590 = vmatprep.mubr.msk.bf16.mxu0 %vm2757_vm2, %v2756_v2  ;;  %v1756_v5 = vpop.permute.xlu1 %1755 }
 0x4e7   : > { %v1403_v47 = vpack.c.bf16 %v1402_v52, %v1402_v52  ;;  %v1761_v9 = vsel %vm931_vm5, %v1756_v5, 0 }
 0x4e8   : > { %v2719_v55 = vpop.eup %2718 }
 0x4e9   : > { %v1515_v57 = vmul.f32 %v2719_v55, %v3096_v3  ;;  %v2721_v63 = vpop.eup %2720 }
 0x4ea   : > { %v1640_v4 = vmul.f32 %v2721_v63, %v3100_v18 }
 0x4eb   : > { %v1516_v59 = vpack.c.bf16 %v1515_v57, %v1515_v57 }
 0x4ec   : > { %v1641_v6 = vpack.c.bf16 %v1640_v4, %v1640_v4 }
 0x4f2   : > { %v1751_v8 = vpop.xlane.xlu0 %1750 }
 0x4f3   : > { %2722 = vrcp.f32 %v1751_v8 }
 0x4f6   : > { %v1405_v53 = vpop.permute.xlu0 %1404 }
 0x4f7   : > { %v1410_v40 = vsel %vm931_vm5, %v1405_v53, 0 }
 0x4f8   : > { %2589 = vmatpush3.bf16.msra.mxu0 %v1410_v40 }
 0x4f9   : > { %2600 = vmatprep.subr.bf16.mxu0 %v2756_v2 }
 0x4fb   : > { %2591 = vmatmul.mubr.msk.bf16.vlgmr.msra.gmra.mxu0 %vm913_vm4, %v1403_v47  ;;  %v2449_v47 = vld [vmem:[%s3311_s26] ss:$0 sm:$0xff] }
 0x4fc   : > { %2601 = vmatpush3.bf16.msra.mxu0 %v1523_v56  ;;  %2602 = vmatprep.mubr.msk.bf16.mxu0 %vm2757_vm2, %v2756_v2 }
 0x4fd   : > { %2612 = vmatprep.subr.bf16.mxu0 %v2756_v2 }
 0x500   : > { %v2723_v7 = vpop.eup %2722 }
 0x501   : > { %v1753_v10 = vmul.f32 %v2723_v7, %v3110_v25 }
 0x503   : > { %2603 = vmatmul.mubr.msk.bf16.vlgmr.msra.gmra.mxu0 %vm913_vm4, %v1516_v59  ;;  %v1754_v12 = vpack.c.bf16 %v1753_v10, %v1753_v10 }
 0x504   : > { %2613 = vmatpush3.bf16.msra.mxu0 %v1648_v1  ;;  %2614 = vmatprep.mubr.msk.bf16.mxu0 %vm2757_vm2, %v2756_v2 }
 0x505   : > { %2624 = vmatprep.subr.bf16.mxu0 %v2756_v2 }
 0x50b   : > { %2615 = vmatmul.mubr.msk.bf16.vlgmr.msra.gmra.mxu0 %vm913_vm4, %v1641_v6 }
 0x50c   : > { %2625 = vmatpush3.bf16.msra.mxu0 %v1761_v9  ;;  %2626 = vmatprep.mubr.msk.bf16.mxu0 %vm2757_vm2, %v2756_v2 }
 0x513   : > { %2627 = vmatmul.mubr.msk.bf16.vlgmr.msra.gmra.mxu0 %vm913_vm4, %v1754_v12 }
 0x568   : > { %v969_v11 = vpop.f32.mrf.mxu0 }
 0x569   : > { %975 = vst.msk [vmem:[#allocation3] sm:$0xff] %vm858_vm3, %v969_v11 }
 0x56a   : > { %v2544_v16 = vpop.f32.mrf.mxu0 }
 0x56c   : > { %v972_v17 = vpop.f32.mrf.mxu0 }
 0x56e   : > { %v2545_v3 = vpop.f32.mrf.mxu0 }
 0x570   : > { %v1082_v14 = vpop.f32.mrf.mxu0 }
 0x571   : > { %1089 = vrot.lane.b32.xlu1 %v1082_v14, %s2763_s20 }
 0x572   : > { %v2556_v18 = vpop.f32.mrf.mxu0 }
 0x574   : > { %v1085_v19 = vpop.f32.mrf.mxu0 }
 0x576   : > { %v2557_v20 = vpop.f32.mrf.mxu0 }
 0x578   : > { %v1208_v21 = vpop.f32.mrf.mxu0 }
 0x579   : > { %1214 = vst.msk [vmem:[#allocation3 + $0x8] sm:$0xff] %vm858_vm3, %v1208_v21 }
 0x57a   : > { %v2568_v2 = vpop.f32.mrf.mxu0 }
 0x57c   : > { %v1211_v22 = vpop.f32.mrf.mxu0 }
 0x57e   : > { %v2569_v23 = vpop.f32.mrf.mxu0 }
 0x5a5   : > { %v1321_v24 = vpop.f32.mrf.mxu0 }
 0x5a6   : > { %1328 = vrot.lane.b32.xlu1 %v1321_v24, %s2763_s20 }
 0x5a7   : > { %v2580_v25 = vpop.f32.mrf.mxu0 }
 0x5a9   : > { %v1324_v26 = vpop.f32.mrf.mxu0 }
 0x5ab   : > { %v2581_v27 = vpop.f32.mrf.mxu0 }
 0x5bb   : > { %v1446_v28 = vpop.f32.mrf.mxu0 }
 0x5bc   : > { %1452 = vst.msk [vmem:[#allocation3 + $0x10] sm:$0xff] %vm858_vm3, %v1446_v28 }
 0x5bd   : > { %v2592_v29 = vpop.f32.mrf.mxu0 }
 0x5be   : > { %v2686_v29 = vld [vmem:[%s2889_s4 + $0x8] sm:$0xff]  }
 0x5bf   : > { %v1449_v30 = vpop.f32.mrf.mxu0  ;;  %2638 = vmatprep.subr.bf16.mxu0 %v2686_v29 }
 0x5c0   : > { %v2687_v30 = vld [vmem:[%s2889_s4] sm:$0xff]   ;;  %2639 = vmatpush3.bf16.msra.mxu0 %v2686_v29 }
 0x5c1   : > { %v2593_v31 = vpop.f32.mrf.mxu0  ;;  %2640 = vmatprep.subr.bf16.mxu0 %v2687_v30 }
 0x5c3   : > { %v1559_v32 = vpop.f32.mrf.mxu0 }
 0x5c4   : > { %1566 = vrot.lane.b32.xlu0 %v1559_v32, %s2763_s20  ;;  %2641 = vmatpush3.bf16.msra.mxu0 %v2687_v30 }
 0x5c5   : > { %v2604_v33 = vpop.f32.mrf.mxu0 }
 0x5c7   : > { %v1562_v13 = vpop.f32.mrf.mxu0 }
 0x5c9   : > { %v2605_v35 = vpop.f32.mrf.mxu0 }
 0x5cb   : > { %v1684_v36 = vpop.f32.mrf.mxu0 }
 0x5cc   : > { %1690 = vst.msk [vmem:[#allocation3 + $0x18] sm:$0xff] %vm858_vm3, %v1684_v36 }
 0x5cd   : > { %v2616_v37 = vpop.f32.mrf.mxu0 }
 0x5cf   : > { %v1687_v38 = vpop.f32.mrf.mxu0 }
 0x5d1   : > { %v2617_v39 = vpop.f32.mrf.mxu0 }
 0x5d3   : > { %v1797_v41 = vpop.f32.mrf.mxu0 }
 0x5d4   : > { %1804 = vrot.lane.b32.xlu1 %v1797_v41, %s2763_s20  ;;  %s3314_s20 = scalar_lea.vmem %s3285_s11, %s2857_s23 }
 0x5d5   : > { %v2628_v42 = vpop.f32.mrf.mxu0 }
 0x5d7   : > { %v1800_v43 = vpop.f32.mrf.mxu0 }
 0x5d9   : > { %v2629_v44 = vpop.f32.mrf.mxu0 }
 0x5da   : > { %v2454_v44 = vld [vmem:[%s3312_s29] ss:$0 sm:$0xff]  ;;  %s3315_s29 = sld [smem:[#allocation11_spill]] }
 0x5e3   : > { %v1090_v45 = vpop.permute.xlu1 %1089 }
 0x5e4   : > { %1093 = vst.msk [vmem:[#allocation3] sm:$0xff] %vm1092_vm6, %v1090_v45 }
 0x5eb   : > { %v1808_v48 = vld [vmem:[#allocation3] sm:$0xff] }
 0x618   : > { %v1329_v46 = vpop.permute.xlu1 %1328 }
 0x619   : > { %1331 = vst.msk [vmem:[#allocation3 + $0x8] sm:$0xff] %vm1092_vm6, %v1329_v46 }
 0x620   : > { %v1809_v49 = vld [vmem:[#allocation3 + $0x8] sm:$0xff] }
 0x621   : > { %v1816_v50 = vpack.c.bf16 %v1809_v49, %v1808_v48 }
 0x623   : > { %2634 = vmatprep.mubr.msk.bf16.mxu1 %vm797_vm1, %v1816_v50 }
 0x636   : > { %v1567_v51 = vpop.permute.xlu0 %1566 }
 0x637   : > { %1569 = vst.msk [vmem:[#allocation3 + $0x10] sm:$0xff] %vm1092_vm6, %v1567_v51  ;;  %v2455_v51 = vld [vmem:[%s3313_s17] ss:$0 sm:$0xff] }
 0x63e   : > { %v1810_v52 = vld [vmem:[#allocation3 + $0x10] sm:$0xff] }
 0x646   : > { %v1805_v8 = vpop.permute.xlu1 %1804 }
 0x647   : > { %1807 = vst.msk [vmem:[#allocation3 + $0x18] sm:$0xff] %vm1092_vm6, %v1805_v8 }
 0x64e   : > { %v1811_v53 = vld [vmem:[#allocation3 + $0x18] sm:$0xff] }
 0x64f   : > { %v1817_v40 = vpack.c.bf16 %v1811_v53, %v1810_v52 }
 0x651   : > { %2635 = vmatmul.mubr.msk.bf16.vlgmr.msra.gmra.mxu1 %vm797_vm1, %v1817_v40 }
 0x711   : > { %v2636_v54 = vpop.f32.mrf.mxu1 }
 0x712   : > { %v1886_v56 = vadd.f32 %v2636_v54, %v2449_v47 }
 0x713   : > { %v1877_v55 = vpop.f32.mrf.mxu1 }
 0x714   : > { %v1878_v57 = vadd.f32 %v2449_v47, %v1877_v55  ;;  %v1894_v6 = vadd.f32 %v1886_v56, %v2949_v62 }
 0x715   : > { %v2637_v58 = vpop.f32.mrf.mxu1 }
 0x716   : > { %v1892_v59 = vadd.f32 %v1878_v57, %v2945_v60  ;;  %v1889_v1 = vadd.f32 %v2637_v58, %v2449_v47  ;;  %v1904_v10 = vsel %vm797_vm1, %v1894_v6, 0.0 }
 0x717   : > { %v1880_v63 = vpop.f32.mrf.mxu1 }
 0x718   : > { %v1881_v4 = vadd.f32 %v2449_v47, %v1880_v63  ;;  %v1898_v5 = vsel %vm797_vm1, %v1892_v59, 0.0  ;;  %v1895_v12 = vadd.f32 %v1889_v1, %v2953_v0  ;;  %v2688_v63 = vld [vmem:[%s2899_s21 + $0x18] sm:$0xff]   ;;  %v2689_v1 = vld [vmem:[%s2899_s21 + $0x10] sm:$0xff]  }
 0x719   : > { %1899 = vadd.xlane.f32.xlu0 %v1898_v5  ;;  %2646 = vmatprep.subr.bf16.mxu1 %v2688_v63  ;;  %v2691_v5 = vld [vmem:[%s2899_s21] sm:$0xff]  }
 0x71a   : > { %v1893_v7 = vadd.f32 %v1881_v4, %v2947_v61  ;;  %v1907_v60 = vsel %vm797_vm1, %v1895_v12, 0.0  ;;  %2647 = vmatpush3.bf16.msra.mxu1 %v2688_v63  ;;  %v2690_v4 = vld [vmem:[%s2899_s21 + $0x8] sm:$0xff]  }
 0x71b   : > { %2648 = vmatprep.subr.bf16.mxu1 %v2689_v1 }
 0x71c   : > { %v1901_v9 = vsel %vm797_vm1, %v1893_v7, 0.0 }
 0x71d   : > { %1902 = vadd.xlane.f32.xlu1 %v1901_v9  ;;  %1905 = vadd.xlane.f32.xlu0 %v1904_v10 }
 0x71e   : > { %2649 = vmatpush3.bf16.msra.mxu1 %v2689_v1 }
 0x71f   : > { %2650 = vmatprep.subr.bf16.mxu1 %v2690_v4 }
 0x721   : > { %1908 = vadd.xlane.f32.xlu0 %v1907_v60 }
 0x722   : > { %2651 = vmatpush3.bf16.msra.mxu1 %v2690_v4 }
 0x723   : > { %2652 = vmatprep.subr.bf16.mxu1 %v2691_v5 }
 0x726   : > { %2653 = vmatpush3.bf16.msra.mxu1 %v2691_v5 }
 0x7a2   : > { %v1900_v11 = vpop.xlane.xlu0 %1899 }
 0x7a3   : > { %v1911_v16 = vmul.f32 0.03125, %v1900_v11 }
 0x7a5   : > { %v1915_v17 = vsub.f32 %v1892_v59, %v1911_v16 }
 0x7a6   : > { %v1903_v3 = vpop.xlane.xlu1 %1902  ;;  %v1906_v14 = vpop.xlane.xlu0 %1905 }
 0x7a7   : > { %v1912_v62 = vmul.f32 0.03125, %v1903_v3  ;;  %v1913_v18 = vmul.f32 0.03125, %v1906_v14  ;;  %v1919_v19 = vmul.f32 %v1915_v17, %v1915_v17 }
 0x7a9   : > { %v1916_v61 = vsub.f32 %v1893_v7, %v1912_v62  ;;  %v1917_v20 = vsub.f32 %v1894_v6, %v1913_v18  ;;  %v1923_v21 = vsel %vm797_vm1, %v1919_v19, 0.0  ;;  %v2456_v6 = vld [vmem:[%s3314_s20] ss:$0 sm:$0xff] }
 0x7aa   : > { %1924 = vadd.xlane.f32.xlu1 %v1923_v21  ;;  %v1909_v0 = vpop.xlane.xlu0 %1908 }
 0x7ab   : > { %v1914_v2 = vmul.f32 0.03125, %v1909_v0  ;;  %v1920_v22 = vmul.f32 %v1916_v61, %v1916_v61  ;;  %v1921_v23 = vmul.f32 %v1917_v20, %v1917_v20 }
 0x7ad   : > { %v1918_v24 = vsub.f32 %v1895_v12, %v1914_v2  ;;  %v1926_v25 = vsel %vm797_vm1, %v1920_v22, 0.0  ;;  %v1929_v26 = vsel %vm797_vm1, %v1921_v23, 0.0 }
 0x7ae   : > { %1927 = vadd.xlane.f32.xlu0 %v1926_v25  ;;  %1930 = vadd.xlane.f32.xlu1 %v1929_v26 }
 0x7af   : > { %v1922_v27 = vmul.f32 %v1918_v24, %v1918_v24 }
 0x7b1   : > { %v1932_v28 = vsel %vm797_vm1, %v1922_v27, 0.0 }
 0x7b2   : > { %1933 = vadd.xlane.f32.xlu0 %v1932_v28 }
 0x833   : > { %v1925_v31 = vpop.xlane.xlu1 %1924 }
 0x834   : > { %v1935_v32 = vmul.f32 0.03125, %v1925_v31 }
 0x836   : > { %v1939_v33 = vadd.f32 1e-12, %v1935_v32 }
 0x837   : > { %v1931_v13 = vpop.xlane.xlu1 %1930  ;;  %v1928_v15 = vpop.xlane.xlu0 %1927 }
 0x838   : > { %2724 = vrsqrt.f32 %v1939_v33  ;;  %v1937_v34 = vmul.f32 0.03125, %v1931_v13  ;;  %v1936_v35 = vmul.f32 0.03125, %v1928_v15 }
 0x83a   : > { %v1941_v36 = vadd.f32 1e-12, %v1937_v34  ;;  %v1940_v37 = vadd.f32 1e-12, %v1936_v35 }
 0x83b   : > { %v1934_v38 = vpop.xlane.xlu0 %1933 }
 0x83c   : > { %2726 = vrsqrt.f32 %v1941_v36  ;;  %v1938_v39 = vmul.f32 0.03125, %v1934_v38 }
 0x83d   : > { %2728 = vrsqrt.f32 %v1940_v37 }
 0x83e   : > { %v1942_v41 = vadd.f32 1e-12, %v1938_v39 }
 0x840   : > { %2730 = vrsqrt.f32 %v1942_v41 }
 0x845   : > { %v2725_v42 = vpop.eup %2724 }
 0x846   : > { %v1947_v43 = vmul.f32 %v2725_v42, %v1915_v17 }
 0x848   : > { %v1957_v50 = vmul.f32 %v2454_v44, %v1947_v43 }
 0x849   : > { %v2727_v45 = vpop.eup %2726 }
 0x84a   : > { %v2729_v46 = vpop.eup %2728  ;;  %v1949_v48 = vmul.f32 %v2727_v45, %v1917_v20  ;;  %v3201_v54 = vadd.f32 %v2455_v51, %v1957_v50 }
 0x84b   : > { %v1948_v49 = vmul.f32 %v2729_v46, %v1916_v61 }
 0x84c   : > { %v1959_v40 = vmul.f32 %v2454_v44, %v1949_v48 }
 0x84d   : > { %v2731_v8 = vpop.eup %2730  ;;  %v1958_v52 = vmul.f32 %v2454_v44, %v1948_v49 }
 0x84e   : > { %v1950_v53 = vmul.f32 %v2731_v8, %v1918_v24  ;;  %v3207_v57 = vadd.f32 %v2455_v51, %v1959_v40 }
 0x84f   : > { %v3203_v47 = vadd.f32 %v2455_v51, %v1958_v52 }
 0x850   : > { %v1960_v55 = vmul.f32 %v2454_v44, %v1950_v53 }
 0x851   : > { %v1975_v56 = vpack.c.bf16 %v3203_v47, %v3201_v54 }
 0x852   : > { %v3209_v58 = vadd.f32 %v2455_v51, %v1960_v55  ;;  %v2461_v51 = vld [vmem:[%s672_s25] ss:$0 sm:$0xff] }
 0x853   : > { %2642 = vmatprep.mubr.msk.bf16.mxu0 %vm797_vm1, %v1975_v56 }
 0x854   : > { %v1976_v59 = vpack.c.bf16 %v3209_v58, %v3207_v57 }
 0x856   : > { %2643 = vmatmul.mubr.msk.bf16.vlgmr.msra.gmra.mxu0 %vm797_vm1, %v1976_v59 }
 0x916   : > { %v2644_v7 = vpop.f32.mrf.mxu0 }
 0x917   : > { %v2045_v9 = vadd.f32 %v2644_v7, %v2456_v6 }
 0x918   : > { %v2036_v10 = vpop.f32.mrf.mxu0 }
 0x919   : > { %v2057_v12 = vmul.f32 0.044715, %v2045_v9  ;;  %v2037_v60 = vadd.f32 %v2456_v6, %v2036_v10  ;;  %v2053_v42 = vmul.f32 0.5, %v2045_v9 }
 0x91a   : > { %v2645_v11 = vpop.f32.mrf.mxu0 }
 0x91b   : > { %v2061_v16 = vmul.f32 %v2057_v12, %v2045_v9  ;;  %v2055_v17 = vmul.f32 0.044715, %v2037_v60  ;;  %v2048_v3 = vadd.f32 %v2645_v11, %v2456_v6  ;;  %v2051_v38 = vmul.f32 0.5, %v2037_v60 }
 0x91c   : > { %v2039_v14 = vpop.f32.mrf.mxu0 }
 0x91d   : > { %v2065_v62 = vmul.f32 %v2061_v16, %v2045_v9  ;;  %v2059_v18 = vmul.f32 %v2055_v17, %v2037_v60  ;;  %v2058_v19 = vmul.f32 0.044715, %v2048_v3  ;;  %v2040_v61 = vadd.f32 %v2456_v6, %v2039_v14 }
 0x91e   : > { %v2054_v36 = vmul.f32 0.5, %v2048_v3 }
 0x91f   : > { %v2069_v20 = vadd.f32 %v2065_v62, %v2045_v9  ;;  %v2063_v21 = vmul.f32 %v2059_v18, %v2037_v60  ;;  %v2062_v0 = vmul.f32 %v2058_v19, %v2048_v3  ;;  %v2056_v2 = vmul.f32 0.044715, %v2040_v61 }
 0x920   : > { %v2052_v39 = vmul.f32 0.5, %v2040_v61 }
 0x921   : > { %v2073_v22 = vmul.f32 0.7978846, %v2069_v20  ;;  %v2067_v23 = vadd.f32 %v2063_v21, %v2037_v60  ;;  %v2066_v24 = vmul.f32 %v2062_v0, %v2048_v3  ;;  %v2060_v25 = vmul.f32 %v2056_v2, %v2040_v61 }
 0x923   : > { %v2071_v26 = vmul.f32 0.7978846, %v2067_v23  ;;  %v2070_v27 = vadd.f32 %v2066_v24, %v2048_v3  ;;  %v2064_v28 = vmul.f32 %v2060_v25, %v2040_v61  ;;  %2732 = vtanh.f32 %v2073_v22 }
 0x925   : > { %v2074_v29 = vmul.f32 0.7978846, %v2070_v27  ;;  %2734 = vtanh.f32 %v2071_v26  ;;  %v2068_v30 = vadd.f32 %v2064_v28, %v2040_v61 }
 0x927   : > { %2736 = vtanh.f32 %v2074_v29  ;;  %v2072_v31 = vmul.f32 0.7978846, %v2068_v30 }
 0x929   : > { %2738 = vtanh.f32 %v2072_v31 }
 0x930   : > { %v2733_v32 = vpop.eup %2732 }
 0x931   : > { %v2081_v37 = vadd.f32 1.0, %v2733_v32 }
 0x932   : > { %v2735_v33 = vpop.eup %2734 }
 0x933   : > { %v2079_v34 = vadd.f32 1.0, %v2735_v33  ;;  %v2085_v46 = vmul.f32 %v2081_v37, %v2053_v42 }
 0x934   : > { %v2737_v13 = vpop.eup %2736 }
 0x935   : > { %v2082_v15 = vadd.f32 1.0, %v2737_v13  ;;  %v2083_v44 = vmul.f32 %v2079_v34, %v2051_v38  ;;  %v2468_v34 = vld [vmem:[%s675_s28] ss:$0 sm:$0xff] }
 0x936   : > { %v2739_v35 = vpop.eup %2738 }
 0x937   : > { %v2080_v41 = vadd.f32 1.0, %v2739_v35  ;;  %v2086_v43 = vmul.f32 %v2082_v15, %v2054_v36  ;;  %v2469_v36 = vld [vmem:[%s678_s3] ss:$0 sm:$0xff] }
 0x939   : > { %v2084_v45 = vmul.f32 %v2080_v41, %v2052_v39  ;;  %v2096_v49 = vpack.c.bf16 %v2086_v43, %v2085_v46 }
 0x93b   : > { %v2095_v48 = vpack.c.bf16 %v2084_v45, %v2083_v44 }
 0x93d   : > { %2654 = vmatprep.mubr.msk.bf16.mxu1 %vm2128_vm7, %v2095_v48 }
 0x93e   : > { %2655 = vmatmul.mubr.msk.bf16.vlgmr.msra.gmra.mxu1 %vm2128_vm7, %v2096_v49 }
 0x9fe   : > { %v2656_v50 = vpop.f32.mrf.mxu1 }
 0x9ff   : > { %v2178_v52 = vadd.f32 %v2656_v50, %v2461_v51 }
 0xa00   : > { %v2169_v8 = vpop.f32.mrf.mxu1 }
 0xa01   : > { %v2170_v53 = vadd.f32 %v2461_v51, %v2169_v8  ;;  %v2186_v4 = vadd.f32 %v2178_v52, %v3207_v57 }
 0xa02   : > { %v2657_v40 = vpop.f32.mrf.mxu1 }
 0xa03   : > { %v2184_v55 = vadd.f32 %v2170_v53, %v3201_v54  ;;  %v2181_v59 = vadd.f32 %v2657_v40, %v2461_v51  ;;  %v2196_v7 = vsel %vm797_vm1, %v2186_v4, 0.0 }
 0xa04   : > { %v2172_v56 = vpop.f32.mrf.mxu1 }
 0xa05   : > { %v2173_v63 = vadd.f32 %v2461_v51, %v2172_v56  ;;  %v2190_v1 = vsel %vm797_vm1, %v2184_v55, 0.0  ;;  %v2187_v9 = vadd.f32 %v2181_v59, %v3209_v58 }
 0xa06   : > { %2191 = vadd.xlane.f32.xlu1 %v2190_v1 }
 0xa07   : > { %v2185_v5 = vadd.f32 %v2173_v63, %v3203_v47  ;;  %v2199_v54 = vsel %vm797_vm1, %v2187_v9, 0.0 }
 0xa09   : > { %v2193_v6 = vsel %vm797_vm1, %v2185_v5, 0.0 }
 0xa0a   : > { %2194 = vadd.xlane.f32.xlu0 %v2193_v6  ;;  %2197 = vadd.xlane.f32.xlu1 %v2196_v7 }
 0xa0e   : > { %2200 = vadd.xlane.f32.xlu0 %v2199_v54 }
 0xa8f   : > { %v2192_v10 = vpop.xlane.xlu1 %2191 }
 0xa90   : > { %v2202_v12 = vmul.f32 0.03125, %v2192_v10 }
 0xa92   : > { %v2206_v60 = vsub.f32 %v2184_v55, %v2202_v12 }
 0xa93   : > { %v2195_v11 = vpop.xlane.xlu0 %2194  ;;  %v2198_v16 = vpop.xlane.xlu1 %2197 }
 0xa94   : > { %v2203_v57 = vmul.f32 0.03125, %v2195_v11  ;;  %v2204_v17 = vmul.f32 0.03125, %v2198_v16  ;;  %v2210_v3 = vmul.f32 %v2206_v60, %v2206_v60 }
 0xa96   : > { %v2207_v47 = vsub.f32 %v2185_v5, %v2203_v57  ;;  %v2208_v14 = vsub.f32 %v2186_v4, %v2204_v17  ;;  %v2214_v62 = vsel %vm797_vm1, %v2210_v3, 0.0 }
 0xa97   : > { %v2201_v18 = vpop.xlane.xlu0 %2200  ;;  %2215 = vadd.xlane.f32.xlu1 %v2214_v62 }
 0xa98   : > { %v2205_v58 = vmul.f32 0.03125, %v2201_v18  ;;  %v2211_v19 = vmul.f32 %v2207_v47, %v2207_v47  ;;  %v2212_v61 = vmul.f32 %v2208_v14, %v2208_v14 }
 0xa9a   : > { %v2209_v20 = vsub.f32 %v2187_v9, %v2205_v58  ;;  %v2217_v21 = vsel %vm797_vm1, %v2211_v19, 0.0  ;;  %v2220_v0 = vsel %vm797_vm1, %v2212_v61, 0.0 }
 0xa9b   : > { %2218 = vadd.xlane.f32.xlu0 %v2217_v21  ;;  %2221 = vadd.xlane.f32.xlu1 %v2220_v0 }
 0xa9c   : > { %v2213_v2 = vmul.f32 %v2209_v20, %v2209_v20 }
 0xa9e   : > { %v2223_v22 = vsel %vm797_vm1, %v2213_v2, 0.0 }
 0xa9f   : > { %2224 = vadd.xlane.f32.xlu0 %v2223_v22 }
 0xb20   : > { %v2216_v23 = vpop.xlane.xlu1 %2215 }
 0xb21   : > { %v2226_v24 = vmul.f32 0.03125, %v2216_v23 }
 0xb23   : > { %v2230_v25 = vadd.f32 1e-12, %v2226_v24 }
 0xb24   : > { %v2219_v26 = vpop.xlane.xlu0 %2218  ;;  %v2222_v27 = vpop.xlane.xlu1 %2221 }
 0xb25   : > { %2740 = vrsqrt.f32 %v2230_v25  ;;  %v2227_v28 = vmul.f32 0.03125, %v2219_v26  ;;  %v2228_v29 = vmul.f32 0.03125, %v2222_v27 }
 0xb27   : > { %v2231_v30 = vadd.f32 1e-12, %v2227_v28  ;;  %v2232_v31 = vadd.f32 1e-12, %v2228_v29 }
 0xb28   : > { %v2225_v32 = vpop.xlane.xlu0 %2224 }
 0xb29   : > { %2742 = vrsqrt.f32 %v2231_v30  ;;  %v2229_v33 = vmul.f32 0.03125, %v2225_v32 }
 0xb2a   : > { %2744 = vrsqrt.f32 %v2232_v31 }
 0xb2b   : > { %v2233_v13 = vadd.f32 1e-12, %v2229_v33 }
 0xb2d   : > { %2746 = vrsqrt.f32 %v2233_v13 }
 0xb32   : > { %v2741_v15 = vpop.eup %2740 }
 0xb33   : > { %v2238_v35 = vmul.f32 %v2741_v15, %v2206_v60 }
 0xb35   : > { %v2248_v37 = vmul.f32 %v2468_v34, %v2238_v35 }
 0xb36   : > { %v2743_v38 = vpop.eup %2742 }
 0xb37   : > { %v2745_v39 = vpop.eup %2744  ;;  %v2258_v41 = vadd.f32 %v2469_v36, %v2248_v37  ;;  %v2239_v42 = vmul.f32 %v2743_v38, %v2207_v47 }
 0xb38   : > { %v2240_v43 = vmul.f32 %v2745_v39, %v2208_v14 }
 0xb39   : > { %2262 = vst.msk [vmem:[#allocation2] sm:$0xff] %vm797_vm1, %v2258_v41  ;;  %2266 = vst.msk [vmem:[%s3315_s29] sm:$0xff] %vm797_vm1, %v2258_v41  ;;  %v2249_v44 = vmul.f32 %v2468_v34, %v2239_v42 }
 0xb3a   : > { %v2747_v45 = vpop.eup %2746  ;;  %v2250_v46 = vmul.f32 %v2468_v34, %v2240_v43 }
 0xb3b   : > { %v2259_v48 = vadd.f32 %v2469_v36, %v2249_v44  ;;  %v2241_v49 = vmul.f32 %v2747_v45, %v2209_v20 }
 0xb3c   : > { %v2260_v50 = vadd.f32 %v2469_v36, %v2250_v46 }
 0xb3d   : > { %2263 = vst.msk [vmem:[#allocation2 + $0x8] sm:$0xff] %vm797_vm1, %v2259_v48  ;;  %2267 = vst.msk [vmem:[%s3315_s29 + $0x8] sm:$0xff] %vm797_vm1, %v2259_v48  ;;  %v2251_v51 = vmul.f32 %v2468_v34, %v2241_v49 }
 0xb3e   : > { %2264 = vst.msk [vmem:[#allocation2 + $0x10] sm:$0xff] %vm797_vm1, %v2260_v50  ;;  %2268 = vst.msk [vmem:[%s3315_s29 + $0x10] sm:$0xff] %vm797_vm1, %v2260_v50 }
 0xb3f   : > { %v2261_v8 = vadd.f32 %v2469_v36, %v2251_v51 }
 0xb41   : > { %2265 = vst.msk [vmem:[#allocation2 + $0x18] sm:$0xff] %vm797_vm1, %v2261_v8  ;;  %2269 = vst.msk [vmem:[%s3315_s29 + $0x18] sm:$0xff] %vm797_vm1, %v2261_v8 }
 0xb42 PF: > { %s3316_s18 = sld [smem:[#allocation4_spill]] }
 0xb48   : > { %s26_s21 = sadd.s32 1, %s3316_s18  }
 0xb49   : > { %p23_p5 = scmp.ge.s32.totalorder %s26_s21, 4  }
 0xb4b   :  { %25 = sbr.rel (!%p23_p5) target bundleno = 7 (0x7), region = 150 }

</bundles_post_ra>
